<compile_context>
chip_gen: v7x
topology: tpu7x:2x2x1
jax: 0.10.0
libtpu: 0.0.40
codegen_flags: <defaults>
</compile_context>

<pallas_src>
import jax
import jax.numpy as jnp
from jax.experimental import pallas as pl
from jax.experimental.pallas import tpu as pltpu


NZ = 100
NZ_PAD = 128                      # layer-1 contraction padded to 128 lanes (in-kernel)
NUM_CLASSES = 10
NUM_CLASSES_PAD = 16
IMG_SIZE = 28
H1 = 256
H2 = 512
OUT = IMG_SIZE * IMG_SIZE         # 784, written exactly (no lane padding)

MAX_TB = 1024                     # batch-tile cap; ~19 MiB VMEM at 1024 (v7x-safe).
                                  # On v5e/v6e (128 MiB VMEM) this can be raised to 2048.


def _cdiv(a, b):
    return -(-a // b)


def _round_up(x, m):
    return _cdiv(x, m) * m


def _generator_kernel(lbl_ref, z_ref, emb_ref,
                      w1_ref, b1_ref,
                      w2_ref, b2_ref,
                      w3_ref, b3_ref,
                      o_ref, zpad_ref):
    tb = z_ref.shape[0]

    # ---- embedding lookup as a one-hot matmul (exact 0/1 selection, f32 MXU);
    #      the (16, 128) table is VMEM-resident across all grid steps.
    labels = lbl_ref[...]                                            # (tb, 1) i32
    classes = jax.lax.broadcasted_iota(jnp.int32, (tb, NUM_CLASSES_PAD), 1)
    onehot = (labels == classes).astype(jnp.float32)                 # (tb, 16)
    embed = jnp.dot(onehot, emb_ref[...],
                    preferred_element_type=jnp.float32)              # (tb, 128)

    # ---- zero-extend z from 100 -> 128 lanes in VMEM (keeps layer-1 K aligned).
    #      Zeroed every step (not just step 0) so it is megacore-safe under
    #      dimension_semantics=("parallel",).
    zpad_ref[...] = jnp.zeros_like(zpad_ref)
    zpad_ref[:, :NZ] = z_ref[...]

    # ---- x = z * label_embedding (tail lanes are 0 * 0 = 0)
    x = (zpad_ref[...] * embed).astype(jnp.bfloat16)                 # (tb, 128)

    # ---- Linear(100 -> 256) + ReLU   (bf16 operands, f32 accumulate)
    h1 = jnp.dot(x, w1_ref[...], preferred_element_type=jnp.float32) + b1_ref[...]
    h1 = jnp.maximum(h1, 0.0)

    # ---- Linear(256 -> 512) + ReLU
    h2 = jnp.dot(h1.astype(jnp.bfloat16), w2_ref[...],
                 preferred_element_type=jnp.float32) + b2_ref[...]
    h2 = jnp.maximum(h2, 0.0)

    # ---- Linear(512 -> 784) + Tanh (f32 tanh, f32 store)
    h3 = jnp.dot(h2.astype(jnp.bfloat16), w3_ref[...],
                 preferred_element_type=jnp.float32) + b3_ref[...]
    o_ref[...] = jnp.tanh(h3).astype(o_ref.dtype)


def init_params(key):
    """Deterministic synthetic parameters matching the nn.Module shapes.

    nn.Linear stores weight as (out, in); we keep them transposed (in, out)
    so the kernel computes x @ W directly. All raw params are f32.
    """
    ks = jax.random.split(key, 7)
    scale = 0.02
    return {
        "label_emb": jax.random.normal(ks[0], (NUM_CLASSES, NZ), jnp.float32) * scale,
        "w1": jax.random.normal(ks[1], (NZ, H1), jnp.float32) * scale,
        "b1": jax.random.normal(ks[2], (H1,), jnp.float32) * scale,
        "w2": jax.random.normal(ks[3], (H1, H2), jnp.float32) * scale,
        "b2": jax.random.normal(ks[4], (H2,), jnp.float32) * scale,
        "w3": jax.random.normal(ks[5], (H2, OUT), jnp.float32) * scale,
        "b3": jax.random.normal(ks[6], (OUT,), jnp.float32) * scale,
    }


def pack_params(params):
    """One-time pad + cast of the raw params into kernel-friendly layout."""
    emb = jnp.zeros((NUM_CLASSES_PAD, NZ_PAD), jnp.float32)
    emb = emb.at[:NUM_CLASSES, :NZ].set(params["label_emb"])
    w1 = jnp.zeros((NZ_PAD, H1), jnp.float32).at[:NZ, :].set(params["w1"])
    return {
        "label_emb": emb,                                    # f32 -> exact gather
        "w1": w1.astype(jnp.bfloat16),                       # (128, 256)
        "b1": params["b1"].reshape(1, H1).astype(jnp.float32),
        "w2": params["w2"].astype(jnp.bfloat16),             # (256, 512)
        "b2": params["b2"].reshape(1, H2).astype(jnp.float32),
        "w3": params["w3"].astype(jnp.bfloat16),             # (512, 784), no OUT pad
        "b3": params["b3"].reshape(1, OUT).astype(jnp.float32),
    }


def generator_forward(z, labels, packed, *, max_tb=MAX_TB):
    """z: (B, 100) f32, labels: (B,) int -> (B, 1, 28, 28) f32."""
    B = z.shape[0]

    # cdiv-based tiling: largest tile <= max_tb with minimal dead rows.
    g = max(_cdiv(B, max_tb), 1)
    tb = _round_up(_cdiv(B, g), 8)
    grid = (_cdiv(B, tb),)

    lbl2d = labels.astype(jnp.int32).reshape(B, 1)           # free metadata reshape

    const = lambda i: (0, 0)

    out2d = pl.pallas_call(
        _generator_kernel,
        out_shape=jax.ShapeDtypeStruct((B, OUT), jnp.float32),
        grid_spec=pltpu.PrefetchScalarGridSpec(
            num_scalar_prefetch=0,
            grid=grid,
            in_specs=[
                pl.BlockSpec((tb, 1), lambda i: (i, 0)),             # labels
                pl.BlockSpec((tb, NZ), lambda i: (i, 0)),            # z (raw 100-wide)
                pl.BlockSpec((NUM_CLASSES_PAD, NZ_PAD), const),      # emb table
                pl.BlockSpec((NZ_PAD, H1), const),                   # w1
                pl.BlockSpec((1, H1), const),                        # b1
                pl.BlockSpec((H1, H2), const),                       # w2
                pl.BlockSpec((1, H2), const),                        # b2
                pl.BlockSpec((H2, OUT), const),                      # w3 (784-wide)
                pl.BlockSpec((1, OUT), const),                       # b3
            ],
            out_specs=pl.BlockSpec((tb, OUT), lambda i: (i, 0)),
            scratch_shapes=[pltpu.VMEM((tb, NZ_PAD), jnp.float32)],  # z zero-extension
        ),
        compiler_params=pltpu.CompilerParams(
            dimension_semantics=("parallel",),
            vmem_limit_bytes=48 * 1024 * 1024,
        ),
    )(
        lbl2d, z,
        packed["label_emb"],
        packed["w1"], packed["b1"],
        packed["w2"], packed["b2"],
        packed["w3"], packed["b3"],
    )

    # (B, 784) -> (B, 1, 28, 28): pure metadata reshape; no slice / extra HBM pass.
    return out2d.reshape(B, 1, IMG_SIZE, IMG_SIZE)


def _reference_forward(z, labels, params):
    embed = params["label_emb"][labels]
    x = z * embed
    h1 = jnp.maximum(x @ params["w1"] + params["b1"][None, :], 0.0)
    h2 = jnp.maximum(h1 @ params["w2"] + params["b2"][None, :], 0.0)
    h3 = jnp.tanh(h2 @ params["w3"] + params["b3"][None, :])
    return h3.reshape(-1, 1, IMG_SIZE, IMG_SIZE)


if __name__ == "__main__":
    key = jax.random.PRNGKey(0)
    k_params, k_z, k_lbl, k_z2, k_lbl2 = jax.random.split(key, 5)

    params = init_params(k_params)
    packed = pack_params(params)

    # --- small batch: single grid step, exact tile fit ---
    B = 8
    z = jax.random.normal(k_z, (B, NZ), jnp.float32)
    labels = jax.random.randint(k_lbl, (B,), 0, NUM_CLASSES, dtype=jnp.int32)

    out = jax.block_until_ready(generator_forward(z, labels, packed))
    assert out.shape == (B, 1, IMG_SIZE, IMG_SIZE), out.shape
    assert out.dtype == jnp.float32
    ref = _reference_forward(z, labels, params)
    # bf16 weights -> relaxed tolerance vs f32 reference
    assert jnp.allclose(out, ref, atol=5e-3, rtol=0.0), float(
        jnp.max(jnp.abs(out - ref)))

    # --- non-multiple-of-8 batch: exercises the overhanging (masked) final tile ---
    B2 = 300
    z2 = jax.random.normal(k_z2, (B2, NZ), jnp.float32)
    labels2 = jax.random.randint(k_lbl2, (B2,), 0, NUM_CLASSES, dtype=jnp.int32)

    out2 = jax.block_until_ready(generator_forward(z2, labels2, packed))
    assert out2.shape == (B2, 1, IMG_SIZE, IMG_SIZE), out2.shape
    ref2 = _reference_forward(z2, labels2, params)
    assert jnp.allclose(out2, ref2, atol=5e-3, rtol=0.0), float(
        jnp.max(jnp.abs(out2 - ref2)))

    # --- same batch with a small tile cap: multi-step grid, VMEM-resident weights
    #     across steps, masked final tile ---
    out3 = jax.block_until_ready(
        generator_forward(z2, labels2, packed, max_tb=128))
    assert jnp.allclose(out3, ref2, atol=5e-3, rtol=0.0), float(
        jnp.max(jnp.abs(out3 - ref2)))

    print("KERNEL_OK")
</pallas_src>

<mosaic_0001>
module attributes {stable_mosaic.version = 11 : i64} {
  func.func @_generator_kernel(%arg0: i32, %arg1: memref<8x1xi32, #tpu.memory_space<vmem>>, %arg2: memref<8x100xf32, #tpu.memory_space<vmem>>, %arg3: memref<16x128xf32, #tpu.memory_space<vmem>>, %arg4: memref<128x256xbf16, #tpu.memory_space<vmem>>, %arg5: memref<1x256xf32, #tpu.memory_space<vmem>>, %arg6: memref<256x512xbf16, #tpu.memory_space<vmem>>, %arg7: memref<1x512xf32, #tpu.memory_space<vmem>>, %arg8: memref<512x784xbf16, #tpu.memory_space<vmem>>, %arg9: memref<1x784xf32, #tpu.memory_space<vmem>>, %arg10: memref<8x784xf32, #tpu.memory_space<vmem>>, %arg11: memref<8x128xf32, #tpu.memory_space<vmem>>) attributes {dimension_semantics = [#tpu.dimension_semantics<parallel>], iteration_bounds = array<i64: 1>, scalar_prefetch = 0 : i64, scratch_operands = 1 : i64, tpu.core_type = #tpu.core_type<tc>, window_params = [{transform_indices = @transform_0, window_bounds = array<i64: 8, 1>}, {transform_indices = @transform_1, window_bounds = array<i64: 8, 100>}, {pipeline_mode = #tpu.pipeline_mode<synchronous>, transform_indices = @transform_2, window_bounds = array<i64: 16, 128>}, {pipeline_mode = #tpu.pipeline_mode<synchronous>, transform_indices = @transform_3, window_bounds = array<i64: 128, 256>}, {pipeline_mode = #tpu.pipeline_mode<synchronous>, transform_indices = @transform_4, window_bounds = array<i64: 1, 256>}, {pipeline_mode = #tpu.pipeline_mode<synchronous>, transform_indices = @transform_5, window_bounds = array<i64: 256, 512>}, {pipeline_mode = #tpu.pipeline_mode<synchronous>, transform_indices = @transform_6, window_bounds = array<i64: 1, 512>}, {pipeline_mode = #tpu.pipeline_mode<synchronous>, transform_indices = @transform_7, window_bounds = array<i64: 512, 784>}, {pipeline_mode = #tpu.pipeline_mode<synchronous>, transform_indices = @transform_8, window_bounds = array<i64: 1, 784>}, {transform_indices = @transform_9, window_bounds = array<i64: 8, 784>}]} {
    %c0 = arith.constant 0 : index
    %c0_0 = arith.constant 0 : index
    %0 = vector.load %arg1[%c0, %c0_0] : memref<8x1xi32, #tpu.memory_space<vmem>>, vector<8x1xi32>
    %1 = tpu.iota {dimensions = array<i32: 1>} : vector<8x16xi32>
    %2 = vector.broadcast %0 : vector<8x1xi32> to vector<8x16xi32>
    %3 = arith.cmpi eq, %2, %1 : vector<8x16xi32>
    %4 = arith.extui %3 : vector<8x16xi1> to vector<8x16xi32>
    %5 = arith.sitofp %4 : vector<8x16xi32> to vector<8x16xf32>
    %c0_1 = arith.constant 0 : index
    %c0_2 = arith.constant 0 : index
    %6 = vector.load %arg3[%c0_1, %c0_2] : memref<16x128xf32, #tpu.memory_space<vmem>>, vector<16x128xf32>
    %cst = arith.constant dense<0.000000e+00> : vector<8x128xf32>
    %7 = tpu.matmul %5, %6, %cst {dimension_numbers = #tpu.dot_dimension_numbers<[1], [0], [0], [1], [0, 0, 1, 1], [], []>} : vector<8x16xf32>, vector<16x128xf32>, vector<8x128xf32> -> vector<8x128xf32>
    %cst_3 = arith.constant 0.000000e+00 : f32
    %8 = vector.broadcast %cst_3 : f32 to vector<8x128xf32>
    %c0_4 = arith.constant 0 : index
    %c0_5 = arith.constant 0 : index
    %9 = vector.load %arg11[%c0_4, %c0_5] : memref<8x128xf32, #tpu.memory_space<vmem>>, vector<8x128xf32>
    tpu.vector_store %arg11[%c0_4, %c0_5], %8 {strides = array<i32>} : memref<8x128xf32, #tpu.memory_space<vmem>>, vector<8x128xf32>,
    %c0_6 = arith.constant 0 : index
    %c0_7 = arith.constant 0 : index
    %10 = vector.load %arg2[%c0_6, %c0_7] : memref<8x100xf32, #tpu.memory_space<vmem>>, vector<8x100xf32>
    %c0_8 = arith.constant 0 : index
    %c0_9 = arith.constant 0 : index
    %11 = vector.load %arg11[%c0_8, %c0_9] : memref<8x128xf32, #tpu.memory_space<vmem>>, vector<8x100xf32>
    tpu.vector_store %arg11[%c0_8, %c0_9], %10 {strides = array<i32>} : memref<8x128xf32, #tpu.memory_space<vmem>>, vector<8x100xf32>,
    %c0_10 = arith.constant 0 : index
    %c0_11 = arith.constant 0 : index
    %12 = vector.load %arg11[%c0_10, %c0_11] : memref<8x128xf32, #tpu.memory_space<vmem>>, vector<8x128xf32>
    %13 = arith.mulf %12, %7 : vector<8x128xf32>
    %14 = arith.truncf %13 : vector<8x128xf32> to vector<8x128xbf16>
    %c0_12 = arith.constant 0 : index
    %c0_13 = arith.constant 0 : index
    %15 = vector.load %arg4[%c0_12, %c0_13] : memref<128x256xbf16, #tpu.memory_space<vmem>>, vector<128x256xbf16>
    %cst_14 = arith.constant dense<0.000000e+00> : vector<8x256xf32>
    %16 = tpu.matmul %14, %15, %cst_14 {dimension_numbers = #tpu.dot_dimension_numbers<[1], [0], [0], [1], [0, 0, 1, 1], [], []>} : vector<8x128xbf16>, vector<128x256xbf16>, vector<8x256xf32> -> vector<8x256xf32>
    %c0_15 = arith.constant 0 : index
    %c0_16 = arith.constant 0 : index
    %17 = vector.load %arg5[%c0_15, %c0_16] : memref<1x256xf32, #tpu.memory_space<vmem>>, vector<1x256xf32>
    %18 = vector.broadcast %17 : vector<1x256xf32> to vector<8x256xf32>
    %19 = arith.addf %16, %18 : vector<8x256xf32>
    %cst_17 = arith.constant 0.000000e+00 : f32
    %20 = vector.broadcast %cst_17 : f32 to vector<8x256xf32>
    %21 = arith.maximumf %19, %20 : vector<8x256xf32>
    %22 = arith.truncf %21 : vector<8x256xf32> to vector<8x256xbf16>
    %c0_18 = arith.constant 0 : index
    %c0_19 = arith.constant 0 : index
    %23 = vector.load %arg6[%c0_18, %c0_19] : memref<256x512xbf16, #tpu.memory_space<vmem>>, vector<256x512xbf16>
    %cst_20 = arith.constant dense<0.000000e+00> : vector<8x512xf32>
    %24 = tpu.matmul %22, %23, %cst_20 {dimension_numbers = #tpu.dot_dimension_numbers<[1], [0], [0], [1], [0, 0, 1, 1], [], []>} : vector<8x256xbf16>, vector<256x512xbf16>, vector<8x512xf32> -> vector<8x512xf32>
    %c0_21 = arith.constant 0 : index
    %c0_22 = arith.constant 0 : index
    %25 = vector.load %arg7[%c0_21, %c0_22] : memref<1x512xf32, #tpu.memory_space<vmem>>, vector<1x512xf32>
    %26 = vector.broadcast %25 : vector<1x512xf32> to vector<8x512xf32>
    %27 = arith.addf %24, %26 : vector<8x512xf32>
    %cst_23 = arith.constant 0.000000e+00 : f32
    %28 = vector.broadcast %cst_23 : f32 to vector<8x512xf32>
    %29 = arith.maximumf %27, %28 : vector<8x512xf32>
    %30 = arith.truncf %29 : vector<8x512xf32> to vector<8x512xbf16>
    %c0_24 = arith.constant 0 : index
    %c0_25 = arith.constant 0 : index
    %31 = vector.load %arg8[%c0_24, %c0_25] : memref<512x784xbf16, #tpu.memory_space<vmem>>, vector<512x784xbf16>
    %cst_26 = arith.constant dense<0.000000e+00> : vector<8x784xf32>
    %32 = tpu.matmul %30, %31, %cst_26 {dimension_numbers = #tpu.dot_dimension_numbers<[1], [0], [0], [1], [0, 0, 1, 1], [], []>} : vector<8x512xbf16>, vector<512x784xbf16>, vector<8x784xf32> -> vector<8x784xf32>
    %c0_27 = arith.constant 0 : index
    %c0_28 = arith.constant 0 : index
    %33 = vector.load %arg9[%c0_27, %c0_28] : memref<1x784xf32, #tpu.memory_space<vmem>>, vector<1x784xf32>
    %34 = vector.broadcast %33 : vector<1x784xf32> to vector<8x784xf32>
    %35 = arith.addf %32, %34 : vector<8x784xf32>
    %36 = math.tanh %35 : vector<8x784xf32>
    %c0_29 = arith.constant 0 : index
    %c0_30 = arith.constant 0 : index
    %37 = vector.load %arg10[%c0_29, %c0_30] : memref<8x784xf32, #tpu.memory_space<vmem>>, vector<8x784xf32>
    tpu.vector_store %arg10[%c0_29, %c0_30], %36 {strides = array<i32>} : memref<8x784xf32, #tpu.memory_space<vmem>>, vector<8x784xf32>,
    return
  }
  func.func @transform_0(%arg0: i32) -> (i32, i32) {
    %c0_i32 = arith.constant 0 : i32
    %c0_i32_0 = arith.constant 0 : i32
    return %arg0, %c0_i32 : i32, i32
  }
  func.func @transform_1(%arg0: i32) -> (i32, i32) {
    %c0_i32 = arith.constant 0 : i32
    %c0_i32_0 = arith.constant 0 : i32
    return %arg0, %c0_i32 : i32, i32
  }
  func.func @transform_2(%arg0: i32) -> (i32, i32) {
    %c0_i32 = arith.constant 0 : i32
    %c0_i32_0 = arith.constant 0 : i32
    %c0_i32_1 = arith.constant 0 : i32
    return %c0_i32, %c0_i32_0 : i32, i32
  }
  func.func @transform_3(%arg0: i32) -> (i32, i32) {
    %c0_i32 = arith.constant 0 : i32
    %c0_i32_0 = arith.constant 0 : i32
    %c0_i32_1 = arith.constant 0 : i32
    return %c0_i32, %c0_i32_0 : i32, i32
  }
  func.func @transform_4(%arg0: i32) -> (i32, i32) {
    %c0_i32 = arith.constant 0 : i32
    %c0_i32_0 = arith.constant 0 : i32
    %c0_i32_1 = arith.constant 0 : i32
    return %c0_i32, %c0_i32_0 : i32, i32
  }
  func.func @transform_5(%arg0: i32) -> (i32, i32) {
    %c0_i32 = arith.constant 0 : i32
    %c0_i32_0 = arith.constant 0 : i32
    %c0_i32_1 = arith.constant 0 : i32
    return %c0_i32, %c0_i32_0 : i32, i32
  }
  func.func @transform_6(%arg0: i32) -> (i32, i32) {
    %c0_i32 = arith.constant 0 : i32
    %c0_i32_0 = arith.constant 0 : i32
    %c0_i32_1 = arith.constant 0 : i32
    return %c0_i32, %c0_i32_0 : i32, i32
  }
  func.func @transform_7(%arg0: i32) -> (i32, i32) {
    %c0_i32 = arith.constant 0 : i32
    %c0_i32_0 = arith.constant 0 : i32
    %c0_i32_1 = arith.constant 0 : i32
    return %c0_i32, %c0_i32_0 : i32, i32
  }
  func.func @transform_8(%arg0: i32) -> (i32, i32) {
    %c0_i32 = arith.constant 0 : i32
    %c0_i32_0 = arith.constant 0 : i32
    %c0_i32_1 = arith.constant 0 : i32
    return %c0_i32, %c0_i32_0 : i32, i32
  }
  func.func @transform_9(%arg0: i32) -> (i32, i32) {
    %c0_i32 = arith.constant 0 : i32
    %c0_i32_0 = arith.constant 0 : i32
    return %arg0, %c0_i32 : i32, i32
  }
}

</mosaic_0001>

<bundles_post_ra>
// kernel: tpu_custom_call.1
= control target key start
LH: loop header
LB: loop body
LE: loop exit
PB: predicated region body
PF: predicated region fallthrough
CT: control target
= control target key end

     0   :  { %v3439_v3 = vmov 0   ;;  %v3440_v4 = vmov 0.0|0.0   ;;  %v3441_v6 = vmov 0.0   ;;  %vm121_vm0 = vcmask 818176   ;;  %s4503_s0 = inlined_call_operand.vmem [shape: s32[8,1], index: 0, kind: input, shape index: {}]   ;;  %s4504_s1 = inlined_call_operand.vmem [shape: f32[8,100], index: 1, kind: input, shape index: {}]   ;;  %s4505_s2 = inlined_call_operand.vmem [shape: f32[16,128], index: 2, kind: input, shape index: {}]   ;;  %s4506_s3 = inlined_call_operand.vmem [shape: bf16[128,256], index: 3, kind: input, shape index: {}]   ;;  %s4507_s4 = inlined_call_operand.vmem [shape: f32[1,256], index: 4, kind: input, shape index: {}]   ;;  %s4508_s5 = inlined_call_operand.vmem [shape: bf16[256,512], index: 5, kind: input, shape index: {}]   ;;  %s4509_s6 = inlined_call_operand.vmem [shape: f32[1,512], index: 6, kind: input, shape index: {}]   ;;  %s4510_s7 = inlined_call_operand.vmem [shape: bf16[512,784], index: 7, kind: input, shape index: {}]   ;;  %s4511_s8 = inlined_call_operand.vmem [shape: f32[1,784], index: 8, kind: input, shape index: {}]   ;;  %s4512_s9 = inlined_call_operand.hbm [shape: f32[8,784], index: 9, kind: output, shape index: {}]  }
   0x1   :  { %v34_v0 = vld [vmem:[%s4503_s0] sm:$0xff]  ;;  %v44_v2 = vld [vmem:[%s4505_s2 + $0x8] sm:$0xff]  ;;  %2960 = vset.pattern.permute.xlu0 %v3439_v3  ;;  %2934 = vmatprep.subr.bf16.mxu1 %v3440_v4  ;;  %119 = vst [vmem:[#allocation2] sm:$0xff] %v3441_v6  ;;  %vm3442_vm1 = vmmov 0  }
   0x2   :  { %v43_v1 = vld [vmem:[%s4505_s2] sm:$0xff]  ;;  %38 = vperm.xlu0 %2960, %v34_v0   ;;  %2931 = vmatprep.mubr.msk.f32.mxu1 %vm3442_vm1, %v3441_v6 }
   0x3   :  { %v2935_v5 = vpack.c.bf16 %v44_v2, %v43_v1  ;;  %v120_v7 = vld [vmem:[%s4504_s1] sm:$0xff] }
   0x4   :  { %122 = vst.msk [vmem:[#allocation2] sm:$0xff] %vm121_vm0, %v120_v7  ;;  %v2963_v8 = vld [vmem:[%s4506_s3 + $0x4] ss:$8 sps:$4 sm:$0xff]  }
   0x5   :  { %2936 = vmatpush3.bf16.msra.mxu1 %v2935_v5 }
   0x6   :  { %234 = vmatprep.subr.bf16.mxu1 %v2963_v8 }
   0x7   :  { %14 = vsyncpa [#allocation4], 0  ;;  %v35_v9 = vlaneseq  ;;  %vm45_vm2 = vcmask 130048   ;;  %v2961_v12 = vld [vmem:[%s4506_s3] ss:$8 sps:$4 sm:$0xff]  }
   0x8   :  { %v2966_v13 = vld [vmem:[%s4506_s3 + $0x14] ss:$8 sps:$4 sm:$0xff]   ;;  %v2964_v15 = vld [vmem:[%s4506_s3 + $0x10] ss:$8 sps:$4 sm:$0xff]   ;;  %v2969_v16 = vld [vmem:[%s4506_s3 + $0x24] ss:$8 sps:$4 sm:$0xff]  }
   0x9   :  { %v36_v10 = vand.u32 127, %v35_v9  ;;  %v2967_v17 = vld [vmem:[%s4506_s3 + $0x20] ss:$8 sps:$4 sm:$0xff]   ;;  %v2972_v18 = vld [vmem:[%s4506_s3 + $0x34] ss:$8 sps:$4 sm:$0xff]  }
   0xa   :  { %v2970_v19 = vld [vmem:[%s4506_s3 + $0x30] ss:$8 sps:$4 sm:$0xff]   ;;  %v2975_v20 = vld [vmem:[%s4506_s3 + $0x44] ss:$8 sps:$4 sm:$0xff]   ;;  %v2973_v21 = vld [vmem:[%s4506_s3 + $0x40] ss:$8 sps:$4 sm:$0xff]  }
   0xb   :  { %v2978_v22 = vld [vmem:[%s4506_s3 + $0x54] ss:$8 sps:$4 sm:$0xff]   ;;  %v2976_v23 = vld [vmem:[%s4506_s3 + $0x50] ss:$8 sps:$4 sm:$0xff]   ;;  %v2981_v24 = vld [vmem:[%s4506_s3 + $0x64] ss:$8 sps:$4 sm:$0xff]  }
   0xc   :  { %v2979_v25 = vld [vmem:[%s4506_s3 + $0x60] ss:$8 sps:$4 sm:$0xff]   ;;  %v2984_v26 = vld [vmem:[%s4506_s3 + $0x74] ss:$8 sps:$4 sm:$0xff]   ;;  %v2982_v27 = vld [vmem:[%s4506_s3 + $0x70] ss:$8 sps:$4 sm:$0xff]  }
   0xd   :  { %v2985_v28 = vld [vmem:[%s4508_s5 + $0x4] ss:$16 sps:$4 sm:$0xff]   ;;  %v2989_v29 = vld [vmem:[%s4508_s5 + $0xc] ss:$16 sps:$4 sm:$0xff]   ;;  %v2990_v30 = vld [vmem:[%s4508_s5] ss:$16 sps:$4 sm:$0xff]  }
   0xe   :  { %v2991_v31 = vld [vmem:[%s4508_s5 + $0x24] ss:$16 sps:$4 sm:$0xff]   ;;  %685 = vmatprep.subr.bf16.mxu0 %v2985_v28  ;;  %v2996_v32 = vld [vmem:[%s4508_s5 + $0x20] ss:$16 sps:$4 sm:$0xff]   ;;  %v2987_v61 = vld [vmem:[%s4508_s5 + $0x8] ss:$16 sps:$4 sm:$0xff]  }
   0xf   :  { %686 = vmatpush1.bf16.msra.mxu0 %v2990_v30  ;;  %v2997_v33 = vld [vmem:[%s4508_s5 + $0x44] ss:$16 sps:$4 sm:$0xff]   ;;  %v3002_v34 = vld [vmem:[%s4508_s5 + $0x40] ss:$16 sps:$4 sm:$0xff]   ;;  %v2995_v63 = vld [vmem:[%s4508_s5 + $0x2c] ss:$16 sps:$4 sm:$0xff]  }
  0x10   :  { %687 = vmatprep.subr.bf16.mxu0 %v2991_v31  ;;  %v3003_v35 = vld [vmem:[%s4508_s5 + $0x64] ss:$16 sps:$4 sm:$0xff]   ;;  %v3008_v36 = vld [vmem:[%s4508_s5 + $0x60] ss:$16 sps:$4 sm:$0xff]   ;;  %v2993_v0 = vld [vmem:[%s4508_s5 + $0x28] ss:$16 sps:$4 sm:$0xff]  }
  0x11   :  { %v3009_v37 = vld [vmem:[%s4508_s5 + $0x84] ss:$16 sps:$4 sm:$0xff]   ;;  %v3014_v38 = vld [vmem:[%s4508_s5 + $0x80] ss:$16 sps:$4 sm:$0xff]   ;;  %v3001_v1 = vld [vmem:[%s4508_s5 + $0x4c] ss:$16 sps:$4 sm:$0xff]  }
  0x12   :  { %v3015_v39 = vld [vmem:[%s4508_s5 + $0xa4] ss:$16 sps:$4 sm:$0xff]   ;;  %v3020_v40 = vld [vmem:[%s4508_s5 + $0xa0] ss:$16 sps:$4 sm:$0xff]   ;;  %v2999_v2 = vld [vmem:[%s4508_s5 + $0x48] ss:$16 sps:$4 sm:$0xff]  }
  0x13   :  { %688 = vmatpush1.bf16.msra.mxu0 %v2996_v32  ;;  %v3021_v41 = vld [vmem:[%s4508_s5 + $0xc4] ss:$16 sps:$4 sm:$0xff]   ;;  %v3026_v42 = vld [vmem:[%s4508_s5 + $0xc0] ss:$16 sps:$4 sm:$0xff]   ;;  %v3005_v4 = vld [vmem:[%s4508_s5 + $0x68] ss:$16 sps:$4 sm:$0xff]  }
  0x14   :  { %689 = vmatprep.subr.bf16.mxu0 %v2997_v33  ;;  %v3027_v43 = vld [vmem:[%s4508_s5 + $0xe4] ss:$16 sps:$4 sm:$0xff]   ;;  %v3032_v44 = vld [vmem:[%s4508_s5 + $0xe0] ss:$16 sps:$4 sm:$0xff]   ;;  %v3013_v5 = vld [vmem:[%s4508_s5 + $0x8c] ss:$16 sps:$4 sm:$0xff]  }
  0x15   :  { %v3033_v45 = vld [vmem:[%s4508_s5 + $0x104] ss:$16 sps:$4 sm:$0xff]   ;;  %v3038_v46 = vld [vmem:[%s4508_s5 + $0x100] ss:$16 sps:$4 sm:$0xff]   ;;  %v3019_v7 = vld [vmem:[%s4508_s5 + $0xac] ss:$16 sps:$4 sm:$0xff]  }
  0x16   :  { %v3039_v47 = vld [vmem:[%s4508_s5 + $0x124] ss:$16 sps:$4 sm:$0xff]   ;;  %v3044_v48 = vld [vmem:[%s4508_s5 + $0x120] ss:$16 sps:$4 sm:$0xff]   ;;  %v3017_v8 = vld [vmem:[%s4508_s5 + $0xa8] ss:$16 sps:$4 sm:$0xff]  }
  0x17   :  { %690 = vmatpush1.bf16.msra.mxu0 %v3002_v34  ;;  %v3045_v49 = vld [vmem:[%s4508_s5 + $0x144] ss:$16 sps:$4 sm:$0xff]   ;;  %v3050_v50 = vld [vmem:[%s4508_s5 + $0x140] ss:$16 sps:$4 sm:$0xff]   ;;  %v3071_v28 = vld [vmem:[%s4508_s5 + $0x1c8] ss:$16 sps:$4 sm:$0xff]  }
  0x18   :  { %691 = vmatprep.subr.bf16.mxu0 %v3003_v35  ;;  %v3051_v51 = vld [vmem:[%s4508_s5 + $0x164] ss:$16 sps:$4 sm:$0xff]   ;;  %v3056_v52 = vld [vmem:[%s4508_s5 + $0x160] ss:$16 sps:$4 sm:$0xff]   ;;  %v3079_v31 = vld [vmem:[%s4508_s5 + $0x1ec] ss:$16 sps:$4 sm:$0xff]  }
  0x19   :  { %v3057_v53 = vld [vmem:[%s4508_s5 + $0x184] ss:$16 sps:$4 sm:$0xff]   ;;  %v3062_v54 = vld [vmem:[%s4508_s5 + $0x180] ss:$16 sps:$4 sm:$0xff]   ;;  %v3077_v32 = vld [vmem:[%s4508_s5 + $0x1e8] ss:$16 sps:$4 sm:$0xff]  }
  0x1a   :  { %v3063_v55 = vld [vmem:[%s4508_s5 + $0x1a4] ss:$16 sps:$4 sm:$0xff]   ;;  %v3068_v56 = vld [vmem:[%s4508_s5 + $0x1a0] ss:$16 sps:$4 sm:$0xff]   ;;  %v3086_v35 = vld [vmem:[%s4510_s7 + $0xc] ss:$28 sps:$4 sm:$0xff]  }
  0x1b   :  { %692 = vmatpush1.bf16.msra.mxu0 %v3008_v36  ;;  %v123_v57 = vld [vmem:[#allocation2] sm:$0xff]  ;;  %v3755_v36 = vshrl.u32 %v35_v9, 7 }
  0x1c   :  { %693 = vmatprep.subr.bf16.mxu0 %v3009_v37  ;;  %v3075_v30 = vld [vmem:[%s4508_s5 + $0x1e4] ss:$16 sps:$4 sm:$0xff]   ;;  %v3080_v33 = vld [vmem:[%s4508_s5 + $0x1e0] ss:$16 sps:$4 sm:$0xff]  }
  0x1d   :  { %v3083_v34 = vld [vmem:[%s4510_s7 + $0x4] ss:$28 sps:$4 sm:$0xff]   ;;  %v3758_v37 = vsub.s32 0, %v3755_v36 }
  0x1f   :  { %694 = vmatpush1.bf16.msra.mxu0 %v3014_v38  ;;  %v142_v38 = vld [vmem:[%s4507_s4] sm:$0x3] }
  0x20   :  { %695 = vmatprep.subr.bf16.mxu0 %v3015_v39  ;;  %v3764_v39 = vsub.s32 1, %v3755_v36 }
  0x23   :  { %696 = vmatpush1.bf16.msra.mxu0 %v3020_v40  ;;  %v147_v40 = vrot.slane %v142_v38, %v3758_v37 }
  0x24   :  { %697 = vmatprep.subr.bf16.mxu0 %v3021_v41  ;;  %v151_v41 = vrot.slane %v142_v38, %v3764_v39  ;;  %v3153_v38 = vld [vmem:[%s4510_s7 + $0x2a0] ss:$28 sps:$4 sm:$0xff]  }
  0x27   :  { %698 = vmatpush1.bf16.msra.mxu0 %v3026_v42 }
  0x28   :  { %699 = vmatprep.subr.bf16.mxu0 %v3027_v43 }
  0x2b   :  { %700 = vmatpush1.bf16.msra.mxu0 %v3032_v44 }
  0x2c   :  { %701 = vmatprep.subr.bf16.mxu0 %v3033_v45 }
  0x2f   :  { %702 = vmatpush1.bf16.msra.mxu0 %v3038_v46 }
  0x30   :  { %703 = vmatprep.subr.bf16.mxu0 %v3039_v47 }
  0x33   :  { %704 = vmatpush1.bf16.msra.mxu0 %v3044_v48 }
  0x34   :  { %705 = vmatprep.subr.bf16.mxu0 %v3045_v49 }
  0x37   :  { %706 = vmatpush1.bf16.msra.mxu0 %v3050_v50  ;;  %v3081_v50 = vld [vmem:[%s4510_s7] ss:$28 sps:$4 sm:$0xff]  }
  0x38   :  { %707 = vmatprep.subr.bf16.mxu0 %v3051_v51  ;;  %v3084_v51 = vld [vmem:[%s4510_s7 + $0x8] ss:$28 sps:$4 sm:$0xff]  }
  0x3b   :  { %708 = vmatpush1.bf16.msra.mxu0 %v3056_v52 }
  0x3c   :  { %709 = vmatprep.subr.bf16.mxu0 %v3057_v53  ;;  %v3089_v53 = vld [vmem:[%s4510_s7 + $0x3c] ss:$28 sps:$4 sm:$0xff]  }
  0x3f   :  { %710 = vmatpush1.bf16.msra.mxu0 %v3062_v54  ;;  %v3092_v54 = vld [vmem:[%s4510_s7 + $0x44] ss:$28 sps:$4 sm:$0xff]  }
  0x40   :  { %711 = vmatprep.subr.bf16.mxu0 %v3063_v55  ;;  %v3087_v55 = vld [vmem:[%s4510_s7 + $0x38] ss:$28 sps:$4 sm:$0xff]  }
  0x43   :  { %712 = vmatpush1.bf16.msra.mxu0 %v3068_v56  ;;  %v3090_v56 = vld [vmem:[%s4510_s7 + $0x40] ss:$28 sps:$4 sm:$0xff]  }
  0x81   :  { %v39_v11 = vpop.permute.xlu0 %38 }
  0x82   :  { %vm40_vm3 = vcmp.eq.s32.totalorder %v39_v11, %v36_v10  ;;  %v3025_v10 = vld [vmem:[%s4508_s5 + $0xcc] ss:$16 sps:$4 sm:$0xff]   ;;  %v3023_v11 = vld [vmem:[%s4508_s5 + $0xc8] ss:$16 sps:$4 sm:$0xff]  }
  0x83   :  { %v2574_v14 = vsel %vm40_vm3, 1.0, %v3441_v6  ;;  %v3011_v6 = vld [vmem:[%s4508_s5 + $0x88] ss:$16 sps:$4 sm:$0xff]  }
  0x84   :  { %2932 = vmatmul.mubr.msk.f32.vlgmr.msra.gmra.mrb[0].mxu1 %vm45_vm2, %v2574_v14  ;;  %v3037_v14 = vld [vmem:[%s4508_s5 + $0x10c] ss:$16 sps:$4 sm:$0xff]  }
  0x85   :  { %235 = vmatpush1.bf16.msra.mxu1 %v2961_v12  ;;  %266 = vmatprep.mubr.bf16.mxu1 %v3439_v3  ;;  %v3007_v3 = vld [vmem:[%s4508_s5 + $0x6c] ss:$16 sps:$4 sm:$0xff]  }
  0x86   :  { %236 = vmatprep.subr.bf16.mxu1 %v2966_v13  ;;  %v3031_v12 = vld [vmem:[%s4508_s5 + $0xec] ss:$16 sps:$4 sm:$0xff]   ;;  %v3029_v13 = vld [vmem:[%s4508_s5 + $0xe8] ss:$16 sps:$4 sm:$0xff]  }
  0x89   :  { %237 = vmatpush1.bf16.msra.mxu1 %v2964_v15  ;;  %v3035_v15 = vld [vmem:[%s4508_s5 + $0x108] ss:$16 sps:$4 sm:$0xff]  }
  0x8a   :  { %238 = vmatprep.subr.bf16.mxu1 %v2969_v16  ;;  %v3043_v16 = vld [vmem:[%s4508_s5 + $0x12c] ss:$16 sps:$4 sm:$0xff]  }
  0x8d   :  { %239 = vmatpush1.bf16.msra.mxu1 %v2967_v17  ;;  %v3041_v17 = vld [vmem:[%s4508_s5 + $0x128] ss:$16 sps:$4 sm:$0xff]  }
  0x8e   :  { %240 = vmatprep.subr.bf16.mxu1 %v2972_v18  ;;  %v3049_v18 = vld [vmem:[%s4508_s5 + $0x14c] ss:$16 sps:$4 sm:$0xff]  }
  0x91   :  { %241 = vmatpush1.bf16.msra.mxu1 %v2970_v19  ;;  %v3047_v19 = vld [vmem:[%s4508_s5 + $0x148] ss:$16 sps:$4 sm:$0xff]  }
  0x92   :  { %242 = vmatprep.subr.bf16.mxu1 %v2975_v20  ;;  %v3055_v20 = vld [vmem:[%s4508_s5 + $0x16c] ss:$16 sps:$4 sm:$0xff]  }
  0x95   :  { %243 = vmatpush1.bf16.msra.mxu1 %v2973_v21  ;;  %v3053_v21 = vld [vmem:[%s4508_s5 + $0x168] ss:$16 sps:$4 sm:$0xff]  }
  0x96   :  { %244 = vmatprep.subr.bf16.mxu1 %v2978_v22  ;;  %v3061_v22 = vld [vmem:[%s4508_s5 + $0x18c] ss:$16 sps:$4 sm:$0xff]  }
  0x99   :  { %245 = vmatpush1.bf16.msra.mxu1 %v2976_v23  ;;  %v3059_v23 = vld [vmem:[%s4508_s5 + $0x188] ss:$16 sps:$4 sm:$0xff]  }
  0x9a   :  { %246 = vmatprep.subr.bf16.mxu1 %v2981_v24  ;;  %v3067_v24 = vld [vmem:[%s4508_s5 + $0x1ac] ss:$16 sps:$4 sm:$0xff]  }
  0x9d   :  { %247 = vmatpush1.bf16.msra.mxu1 %v2979_v25  ;;  %v3065_v25 = vld [vmem:[%s4508_s5 + $0x1a8] ss:$16 sps:$4 sm:$0xff]  }
  0x9e   :  { %248 = vmatprep.subr.bf16.mxu1 %v2984_v26  ;;  %v3069_v26 = vld [vmem:[%s4508_s5 + $0x1c4] ss:$16 sps:$4 sm:$0xff]  }
  0x9f   :  { %713 = vmatprep.subr.bf16.mxu0 %v3069_v26  ;;  %v3143_v26 = vld [vmem:[%s4510_s7 + $0x234] ss:$28 sps:$4 sm:$0xff]  }
  0xa1   :  { %249 = vmatpush1.bf16.msra.mxu1 %v2982_v27  ;;  %v3073_v27 = vld [vmem:[%s4508_s5 + $0x1cc] ss:$16 sps:$4 sm:$0xff]  }
  0xa2   :  { %726 = vmatprep.subr.bf16.mxu1 %v2989_v29  ;;  %v3074_v29 = vld [vmem:[%s4508_s5 + $0x1c0] ss:$16 sps:$4 sm:$0xff]  }
  0xa3   :  { %714 = vmatpush1.bf16.msra.mxu0 %v3074_v29  ;;  %v3144_v29 = vld [vmem:[%s4510_s7 + $0x238] ss:$28 sps:$4 sm:$0xff]  }
  0xa4   :  { %715 = vmatprep.subr.bf16.mxu0 %v3075_v30  ;;  %v3149_v30 = vld [vmem:[%s4510_s7 + $0x26c] ss:$28 sps:$4 sm:$0xff]  }
  0xa7   :  { %716 = vmatpush1.bf16.msra.mxu0 %v3080_v33  ;;  %v3150_v33 = vld [vmem:[%s4510_s7 + $0x270] ss:$28 sps:$4 sm:$0xff]  }
  0xa8   :  { %2220 = vmatprep.subr.bf16.mxu0 %v3083_v34  ;;  %v3155_v34 = vld [vmem:[%s4510_s7 + $0x2a4] ss:$28 sps:$4 sm:$0xff]  }
 0x157   :  { %v115_v58 = vpop.f32.mrb[0].mxu1 }
 0x158   :  { %v124_v59 = vmul.f32 %v123_v57, %v115_v58  ;;  %v2933_v60 = vpop.f32.mrb[1].mxu1  ;;  %v3095_v57 = vld [vmem:[%s4510_s7 + $0x74] ss:$28 sps:$4 sm:$0xff]   ;;  %v3098_v58 = vld [vmem:[%s4510_s7 + $0x7c] ss:$28 sps:$4 sm:$0xff]  }
 0x159   :  { %v3096_v60 = vld [vmem:[%s4510_s7 + $0x78] ss:$28 sps:$4 sm:$0xff]  }
 0x15a   :  { %v125_v62 = vpack.c.bf16 %v124_v59, %v124_v59  ;;  %v3093_v59 = vld [vmem:[%s4510_s7 + $0x70] ss:$28 sps:$4 sm:$0xff]  }
 0x15c   :  { %267 = vmatmul.mubr.bf16.vlgmr.msra.gmra.mrb[4].mxu1 %v125_v62  ;;  %v3104_v62 = vld [vmem:[%s4510_s7 + $0xb4] ss:$28 sps:$4 sm:$0xff]  }
 0x15d   :  { %727 = vmatpush1.bf16.msra.mxu1 %v2987_v61  ;;  %v3101_v61 = vld [vmem:[%s4510_s7 + $0xac] ss:$28 sps:$4 sm:$0xff]  }
 0x15e   :  { %728 = vmatprep.subr.bf16.mxu1 %v2995_v63  ;;  %v3099_v63 = vld [vmem:[%s4510_s7 + $0xa8] ss:$28 sps:$4 sm:$0xff]  }
 0x161   :  { %729 = vmatpush1.bf16.msra.mxu1 %v2993_v0  ;;  %v3102_v0 = vld [vmem:[%s4510_s7 + $0xb0] ss:$28 sps:$4 sm:$0xff]  }
 0x162   :  { %730 = vmatprep.subr.bf16.mxu1 %v3001_v1  ;;  %v3107_v1 = vld [vmem:[%s4510_s7 + $0xe4] ss:$28 sps:$4 sm:$0xff]  }
 0x165   :  { %731 = vmatpush1.bf16.msra.mxu1 %v2999_v2  ;;  %v3110_v2 = vld [vmem:[%s4510_s7 + $0xec] ss:$28 sps:$4 sm:$0xff]  }
 0x166   :  { %732 = vmatprep.subr.bf16.mxu1 %v3007_v3  ;;  %v3105_v3 = vld [vmem:[%s4510_s7 + $0xe0] ss:$28 sps:$4 sm:$0xff]  }
 0x169   :  { %733 = vmatpush1.bf16.msra.mxu1 %v3005_v4  ;;  %v3108_v4 = vld [vmem:[%s4510_s7 + $0xe8] ss:$28 sps:$4 sm:$0xff]  }
 0x16a   :  { %734 = vmatprep.subr.bf16.mxu1 %v3013_v5  ;;  %v3113_v5 = vld [vmem:[%s4510_s7 + $0x11c] ss:$28 sps:$4 sm:$0xff]  }
 0x16d   :  { %735 = vmatpush1.bf16.msra.mxu1 %v3011_v6  ;;  %v3116_v6 = vld [vmem:[%s4510_s7 + $0x124] ss:$28 sps:$4 sm:$0xff]  }
 0x16e   :  { %736 = vmatprep.subr.bf16.mxu1 %v3019_v7  ;;  %v3111_v7 = vld [vmem:[%s4510_s7 + $0x118] ss:$28 sps:$4 sm:$0xff]  }
 0x171   :  { %737 = vmatpush1.bf16.msra.mxu1 %v3017_v8  ;;  %v3114_v8 = vld [vmem:[%s4510_s7 + $0x120] ss:$28 sps:$4 sm:$0xff]  }
 0x172   :  { %738 = vmatprep.subr.bf16.mxu1 %v3025_v10  ;;  %v3119_v10 = vld [vmem:[%s4510_s7 + $0x154] ss:$28 sps:$4 sm:$0xff]  }
 0x175   :  { %739 = vmatpush1.bf16.msra.mxu1 %v3023_v11  ;;  %v3122_v11 = vld [vmem:[%s4510_s7 + $0x15c] ss:$28 sps:$4 sm:$0xff]  }
 0x176   :  { %740 = vmatprep.subr.bf16.mxu1 %v3031_v12  ;;  %v3117_v12 = vld [vmem:[%s4510_s7 + $0x150] ss:$28 sps:$4 sm:$0xff]  }
 0x179   :  { %741 = vmatpush1.bf16.msra.mxu1 %v3029_v13  ;;  %v3120_v13 = vld [vmem:[%s4510_s7 + $0x158] ss:$28 sps:$4 sm:$0xff]  }
 0x17a   :  { %742 = vmatprep.subr.bf16.mxu1 %v3037_v14  ;;  %v3125_v14 = vld [vmem:[%s4510_s7 + $0x18c] ss:$28 sps:$4 sm:$0xff]  }
 0x17d   :  { %743 = vmatpush1.bf16.msra.mxu1 %v3035_v15  ;;  %v3128_v15 = vld [vmem:[%s4510_s7 + $0x194] ss:$28 sps:$4 sm:$0xff]  }
 0x17e   :  { %744 = vmatprep.subr.bf16.mxu1 %v3043_v16  ;;  %v3123_v16 = vld [vmem:[%s4510_s7 + $0x188] ss:$28 sps:$4 sm:$0xff]  }
 0x181   :  { %745 = vmatpush1.bf16.msra.mxu1 %v3041_v17  ;;  %v3126_v17 = vld [vmem:[%s4510_s7 + $0x190] ss:$28 sps:$4 sm:$0xff]  }
 0x182   :  { %746 = vmatprep.subr.bf16.mxu1 %v3049_v18  ;;  %v3131_v18 = vld [vmem:[%s4510_s7 + $0x1c4] ss:$28 sps:$4 sm:$0xff]  }
 0x185   :  { %747 = vmatpush1.bf16.msra.mxu1 %v3047_v19  ;;  %v3134_v19 = vld [vmem:[%s4510_s7 + $0x1cc] ss:$28 sps:$4 sm:$0xff]  }
 0x186   :  { %748 = vmatprep.subr.bf16.mxu1 %v3055_v20  ;;  %v3129_v20 = vld [vmem:[%s4510_s7 + $0x1c0] ss:$28 sps:$4 sm:$0xff]  }
 0x189   :  { %749 = vmatpush1.bf16.msra.mxu1 %v3053_v21  ;;  %v3132_v21 = vld [vmem:[%s4510_s7 + $0x1c8] ss:$28 sps:$4 sm:$0xff]  }
 0x18a   :  { %750 = vmatprep.subr.bf16.mxu1 %v3061_v22  ;;  %v3137_v22 = vld [vmem:[%s4510_s7 + $0x1fc] ss:$28 sps:$4 sm:$0xff]  }
 0x18d   :  { %751 = vmatpush1.bf16.msra.mxu1 %v3059_v23  ;;  %v3140_v23 = vld [vmem:[%s4510_s7 + $0x204] ss:$28 sps:$4 sm:$0xff]  }
 0x18e   :  { %752 = vmatprep.subr.bf16.mxu1 %v3067_v24  ;;  %v3135_v24 = vld [vmem:[%s4510_s7 + $0x1f8] ss:$28 sps:$4 sm:$0xff]  }
 0x191   :  { %753 = vmatpush1.bf16.msra.mxu1 %v3065_v25  ;;  %v3138_v25 = vld [vmem:[%s4510_s7 + $0x200] ss:$28 sps:$4 sm:$0xff]  }
 0x192   :  { %754 = vmatprep.subr.bf16.mxu1 %v3073_v27  ;;  %v3146_v27 = vld [vmem:[%s4510_s7 + $0x23c] ss:$28 sps:$4 sm:$0xff]  }
 0x195   :  { %755 = vmatpush1.bf16.msra.mxu1 %v3071_v28  ;;  %v3141_v28 = vld [vmem:[%s4510_s7 + $0x230] ss:$28 sps:$4 sm:$0xff]  }
 0x196   :  { %756 = vmatprep.subr.bf16.mxu1 %v3079_v31  ;;  %v3152_v31 = vld [vmem:[%s4510_s7 + $0x274] ss:$28 sps:$4 sm:$0xff]  }
 0x199   :  { %757 = vmatpush1.bf16.msra.mxu1 %v3077_v32  ;;  %v3147_v32 = vld [vmem:[%s4510_s7 + $0x268] ss:$28 sps:$4 sm:$0xff]  }
 0x19a   :  { %2302 = vmatprep.subr.bf16.mxu1 %v3086_v35  ;;  %v3158_v35 = vld [vmem:[%s4510_s7 + $0x2ac] ss:$28 sps:$4 sm:$0xff]  }
 0x22f   :  { %v268_v42 = vpop.f32.mrb[4].mxu1 }
 0x230   :  { %v269_v43 = vadd.f32 %v268_v42, %v147_v40  ;;  %v270_v44 = vpop.f32.mrb[5].mxu1  ;;  %v3156_v40 = vld [vmem:[%s4510_s7 + $0x2a8] ss:$28 sps:$4 sm:$0xff]  }
 0x231   :  { %v271_v45 = vadd.f32 %v270_v44, %v151_v41  ;;  %v272_v9 = vpop.f32.mrb[6].mxu1  ;;  %v3161_v41 = vld [vmem:[%s4510_s7 + $0x2dc] ss:$28 sps:$4 sm:$0xff]   ;;  %v3164_v42 = vld [vmem:[%s4510_s7 + $0x2e4] ss:$28 sps:$4 sm:$0xff]  }
 0x232   :  { %v275_v46 = vmax.f32 %v269_v43, 0.0  ;;  %v273_v47 = vpop.f32.mrb[7].mxu1  ;;  %v3159_v43 = vld [vmem:[%s4510_s7 + $0x2d8] ss:$28 sps:$4 sm:$0xff]   ;;  %v3162_v44 = vld [vmem:[%s4510_s7 + $0x2e0] ss:$28 sps:$4 sm:$0xff]  }
 0x233   :  { %v276_v48 = vmax.f32 %v271_v45, 0.0  ;;  %v3167_v45 = vld [vmem:[%s4510_s7 + $0x314] ss:$28 sps:$4 sm:$0xff]   ;;  %v3170_v9 = vld [vmem:[%s4510_s7 + $0x31c] ss:$28 sps:$4 sm:$0xff]  }
 0x234   :  { %v277_v52 = vpack.c.bf16 %v275_v46, %v275_v46  ;;  %v3165_v46 = vld [vmem:[%s4510_s7 + $0x310] ss:$28 sps:$4 sm:$0xff]   ;;  %v3168_v47 = vld [vmem:[%s4510_s7 + $0x318] ss:$28 sps:$4 sm:$0xff]  }
 0x235   :  { %v278_v49 = vpack.c.bf16 %v276_v48, %v276_v48  ;;  %v3173_v48 = vld [vmem:[%s4510_s7 + $0x34c] ss:$28 sps:$4 sm:$0xff]  }
 0x237   :  { %717 = vmatprep.mubr.bf16.mxu0 %v278_v49  ;;  %758 = vmatprep.mubr.bf16.mxu1 %v278_v49  ;;  %v3176_v49 = vld [vmem:[%s4510_s7 + $0x354] ss:$28 sps:$4 sm:$0xff]  }
 0x238   :  { %718 = vmatmul.mubr.bf16.vlgmr.msra.gmra.mrb[0].mxu0 %v277_v52  ;;  %759 = vmatmul.mubr.bf16.vlgmr.msra.gmra.mrb[8].mxu1 %v277_v52  ;;  %v3179_v52 = vld [vmem:[%s4510_s7 + $0x384] ss:$28 sps:$4 sm:$0xff]  }
 0x239   :  { %2221 = vmatpush1.bf16.msra.mxu0 %v3081_v50  ;;  %2303 = vmatpush1.bf16.msra.mxu1 %v3084_v51  ;;  %v3171_v50 = vld [vmem:[%s4510_s7 + $0x348] ss:$28 sps:$4 sm:$0xff]   ;;  %v3174_v51 = vld [vmem:[%s4510_s7 + $0x350] ss:$28 sps:$4 sm:$0xff]  }
 0x23a   :  { %2222 = vmatprep.subr.bf16.mxu0 %v3089_v53  ;;  %2304 = vmatprep.subr.bf16.mxu1 %v3092_v54  ;;  %v3182_v53 = vld [vmem:[%s4510_s7 + $0x38c] ss:$28 sps:$4 sm:$0xff]   ;;  %v3963_v54 = vld [vmem:[%s4509_s6] sm:$0xf] }
 0x23d   :  { %2223 = vmatpush1.bf16.msra.mxu0 %v3087_v55  ;;  %2305 = vmatpush1.bf16.msra.mxu1 %v3090_v56  ;;  %v359_v55 = vsub.s32 3, %v3755_v36  ;;  %v348_v56 = vrot.slane %v3963_v54, %v3758_v37 }
 0x23e   :  { %2224 = vmatprep.subr.bf16.mxu0 %v3095_v57  ;;  %2306 = vmatprep.subr.bf16.mxu1 %v3098_v58  ;;  %v352_v57 = vrot.slane %v3963_v54, %v3764_v39 }
 0x23f   :  { %v360_v58 = vrot.slane %v3963_v54, %v359_v55 }
 0x241   :  { %2225 = vmatpush1.bf16.msra.mxu0 %v3093_v59  ;;  %2307 = vmatpush1.bf16.msra.mxu1 %v3096_v60 }
 0x242   :  { %2226 = vmatprep.subr.bf16.mxu0 %v3101_v61  ;;  %2308 = vmatprep.subr.bf16.mxu1 %v3104_v62 }
 0x245   :  { %2227 = vmatpush1.bf16.msra.mxu0 %v3099_v63  ;;  %2309 = vmatpush1.bf16.msra.mxu1 %v3102_v0 }
 0x246   :  { %2228 = vmatprep.subr.bf16.mxu0 %v3107_v1  ;;  %2310 = vmatprep.subr.bf16.mxu1 %v3110_v2 }
 0x249   :  { %2229 = vmatpush1.bf16.msra.mxu0 %v3105_v3  ;;  %2311 = vmatpush1.bf16.msra.mxu1 %v3108_v4 }
 0x24a   :  { %2230 = vmatprep.subr.bf16.mxu0 %v3113_v5  ;;  %2312 = vmatprep.subr.bf16.mxu1 %v3116_v6 }
 0x24d   :  { %2231 = vmatpush1.bf16.msra.mxu0 %v3111_v7  ;;  %2313 = vmatpush1.bf16.msra.mxu1 %v3114_v8 }
 0x24e   :  { %2232 = vmatprep.subr.bf16.mxu0 %v3119_v10  ;;  %2314 = vmatprep.subr.bf16.mxu1 %v3122_v11  ;;  %v3177_v11 = vld [vmem:[%s4510_s7 + $0x380] ss:$28 sps:$4 sm:$0xff]  }
 0x251   :  { %2233 = vmatpush1.bf16.msra.mxu0 %v3117_v12  ;;  %2315 = vmatpush1.bf16.msra.mxu1 %v3120_v13  ;;  %v3180_v12 = vld [vmem:[%s4510_s7 + $0x388] ss:$28 sps:$4 sm:$0xff]  }
 0x252   :  { %2234 = vmatprep.subr.bf16.mxu0 %v3125_v14  ;;  %2316 = vmatprep.subr.bf16.mxu1 %v3128_v15  ;;  %v3185_v14 = vld [vmem:[%s4510_s7 + $0x3bc] ss:$28 sps:$4 sm:$0xff]   ;;  %v3188_v15 = vld [vmem:[%s4510_s7 + $0x3c4] ss:$28 sps:$4 sm:$0xff]  }
 0x255   :  { %2235 = vmatpush1.bf16.msra.mxu0 %v3123_v16  ;;  %2317 = vmatpush1.bf16.msra.mxu1 %v3126_v17  ;;  %v3183_v17 = vld [vmem:[%s4510_s7 + $0x3b8] ss:$28 sps:$4 sm:$0xff]  }
 0x256   :  { %2236 = vmatprep.subr.bf16.mxu0 %v3131_v18  ;;  %2318 = vmatprep.subr.bf16.mxu1 %v3134_v19  ;;  %v3186_v18 = vld [vmem:[%s4510_s7 + $0x3c0] ss:$28 sps:$4 sm:$0xff]   ;;  %v3191_v19 = vld [vmem:[%s4510_s7 + $0x3f4] ss:$28 sps:$4 sm:$0xff]  }
 0x259   :  { %2237 = vmatpush1.bf16.msra.mxu0 %v3129_v20  ;;  %2319 = vmatpush1.bf16.msra.mxu1 %v3132_v21  ;;  %v3194_v20 = vld [vmem:[%s4510_s7 + $0x3fc] ss:$28 sps:$4 sm:$0xff]   ;;  %v3189_v21 = vld [vmem:[%s4510_s7 + $0x3f0] ss:$28 sps:$4 sm:$0xff]  }
 0x25a   :  { %2238 = vmatprep.subr.bf16.mxu0 %v3137_v22  ;;  %2320 = vmatprep.subr.bf16.mxu1 %v3140_v23  ;;  %v3192_v22 = vld [vmem:[%s4510_s7 + $0x3f8] ss:$28 sps:$4 sm:$0xff]   ;;  %v3197_v23 = vld [vmem:[%s4510_s7 + $0x42c] ss:$28 sps:$4 sm:$0xff]  }
 0x25d   :  { %2239 = vmatpush1.bf16.msra.mxu0 %v3135_v24  ;;  %2321 = vmatpush1.bf16.msra.mxu1 %v3138_v25  ;;  %v3200_v24 = vld [vmem:[%s4510_s7 + $0x434] ss:$28 sps:$4 sm:$0xff]   ;;  %v3195_v25 = vld [vmem:[%s4510_s7 + $0x428] ss:$28 sps:$4 sm:$0xff]  }
 0x25e   :  { %2240 = vmatprep.subr.bf16.mxu0 %v3143_v26  ;;  %2322 = vmatprep.subr.bf16.mxu1 %v3146_v27  ;;  %v3198_v26 = vld [vmem:[%s4510_s7 + $0x430] ss:$28 sps:$4 sm:$0xff]   ;;  %v3203_v27 = vld [vmem:[%s4510_s7 + $0x464] ss:$28 sps:$4 sm:$0xff]  }
 0x261   :  { %2241 = vmatpush1.bf16.msra.mxu0 %v3141_v28  ;;  %2323 = vmatpush1.bf16.msra.mxu1 %v3144_v29  ;;  %v3206_v28 = vld [vmem:[%s4510_s7 + $0x46c] ss:$28 sps:$4 sm:$0xff]   ;;  %v3201_v29 = vld [vmem:[%s4510_s7 + $0x460] ss:$28 sps:$4 sm:$0xff]  }
 0x262   :  { %2242 = vmatprep.subr.bf16.mxu0 %v3149_v30  ;;  %2324 = vmatprep.subr.bf16.mxu1 %v3152_v31  ;;  %v3204_v30 = vld [vmem:[%s4510_s7 + $0x468] ss:$28 sps:$4 sm:$0xff]   ;;  %v3209_v31 = vld [vmem:[%s4510_s7 + $0x49c] ss:$28 sps:$4 sm:$0xff]  }
 0x265   :  { %2243 = vmatpush1.bf16.msra.mxu0 %v3147_v32  ;;  %2325 = vmatpush1.bf16.msra.mxu1 %v3150_v33  ;;  %v3212_v32 = vld [vmem:[%s4510_s7 + $0x4a4] ss:$28 sps:$4 sm:$0xff]   ;;  %v3207_v33 = vld [vmem:[%s4510_s7 + $0x498] ss:$28 sps:$4 sm:$0xff]  }
 0x266   :  { %2244 = vmatprep.subr.bf16.mxu0 %v3155_v34  ;;  %2326 = vmatprep.subr.bf16.mxu1 %v3158_v35  ;;  %v3210_v34 = vld [vmem:[%s4510_s7 + $0x4a0] ss:$28 sps:$4 sm:$0xff]   ;;  %v3215_v35 = vld [vmem:[%s4510_s7 + $0x4d4] ss:$28 sps:$4 sm:$0xff]  }
 0x269   :  { %2245 = vmatpush1.bf16.msra.mxu0 %v3153_v38  ;;  %2327 = vmatpush1.bf16.msra.mxu1 %v3156_v40  ;;  %v3218_v38 = vld [vmem:[%s4510_s7 + $0x4dc] ss:$28 sps:$4 sm:$0xff]   ;;  %v3213_v40 = vld [vmem:[%s4510_s7 + $0x4d0] ss:$28 sps:$4 sm:$0xff]  }
 0x26a   :  { %2246 = vmatprep.subr.bf16.mxu0 %v3161_v41  ;;  %2328 = vmatprep.subr.bf16.mxu1 %v3164_v42  ;;  %v3216_v41 = vld [vmem:[%s4510_s7 + $0x4d8] ss:$28 sps:$4 sm:$0xff]   ;;  %v3221_v42 = vld [vmem:[%s4510_s7 + $0x50c] ss:$28 sps:$4 sm:$0xff]  }
 0x26d   :  { %2247 = vmatpush1.bf16.msra.mxu0 %v3159_v43  ;;  %2329 = vmatpush1.bf16.msra.mxu1 %v3162_v44  ;;  %v3224_v43 = vld [vmem:[%s4510_s7 + $0x514] ss:$28 sps:$4 sm:$0xff]   ;;  %v3219_v44 = vld [vmem:[%s4510_s7 + $0x508] ss:$28 sps:$4 sm:$0xff]  }
 0x26e   :  { %2248 = vmatprep.subr.bf16.mxu0 %v3167_v45  ;;  %2330 = vmatprep.subr.bf16.mxu1 %v3170_v9  ;;  %v3222_v45 = vld [vmem:[%s4510_s7 + $0x510] ss:$28 sps:$4 sm:$0xff]   ;;  %v3227_v9 = vld [vmem:[%s4510_s7 + $0x544] ss:$28 sps:$4 sm:$0xff]  }
 0x271   :  { %2249 = vmatpush1.bf16.msra.mxu0 %v3165_v46  ;;  %2331 = vmatpush1.bf16.msra.mxu1 %v3168_v47  ;;  %v3230_v46 = vld [vmem:[%s4510_s7 + $0x54c] ss:$28 sps:$4 sm:$0xff]   ;;  %v3225_v47 = vld [vmem:[%s4510_s7 + $0x540] ss:$28 sps:$4 sm:$0xff]  }
 0x272   :  { %2250 = vmatprep.subr.bf16.mxu0 %v3173_v48  ;;  %2332 = vmatprep.subr.bf16.mxu1 %v3176_v49  ;;  %v3228_v48 = vld [vmem:[%s4510_s7 + $0x548] ss:$28 sps:$4 sm:$0xff]   ;;  %v3233_v49 = vld [vmem:[%s4510_s7 + $0x57c] ss:$28 sps:$4 sm:$0xff]  }
 0x275   :  { %2251 = vmatpush1.bf16.msra.mxu0 %v3171_v50  ;;  %2333 = vmatpush1.bf16.msra.mxu1 %v3174_v51  ;;  %v3236_v50 = vld [vmem:[%s4510_s7 + $0x584] ss:$28 sps:$4 sm:$0xff]   ;;  %v3231_v51 = vld [vmem:[%s4510_s7 + $0x578] ss:$28 sps:$4 sm:$0xff]  }
 0x276   :  { %2261 = vmatprep.subr.bf16.mxu0 %v3179_v52  ;;  %2343 = vmatprep.subr.bf16.mxu1 %v3182_v53  ;;  %v3234_v52 = vld [vmem:[%s4510_s7 + $0x580] ss:$28 sps:$4 sm:$0xff]   ;;  %v3239_v53 = vld [vmem:[%s4510_s7 + $0x5b4] ss:$28 sps:$4 sm:$0xff]  }
 0x30b   :  { %v719_v59 = vpop.f32.mrb[0].mxu0  ;;  %v3973_v60 = vpop.f32.mrb[8].mxu1 }
 0x30c   :  { %v720_v61 = vadd.f32 %v719_v59, %v348_v56  ;;  %v721_v62 = vpop.f32.mrb[1].mxu0  ;;  %v762_v63 = vpop.f32.mrb[9].mxu1  ;;  %v3242_v56 = vld [vmem:[%s4510_s7 + $0x5bc] ss:$28 sps:$4 sm:$0xff]   ;;  %v3245_v59 = vld [vmem:[%s4510_s7 + $0x5ec] ss:$28 sps:$4 sm:$0xff]  }
 0x30d   :  { %v722_v0 = vadd.f32 %v721_v62, %v352_v57  ;;  %v763_v1 = vadd.f32 %v762_v63, %v360_v58  ;;  %v723_v2 = vpop.f32.mrb[2].mxu0  ;;  %v764_v3 = vpop.f32.mrb[10].mxu1  ;;  %v3237_v57 = vld [vmem:[%s4510_s7 + $0x5b0] ss:$28 sps:$4 sm:$0xff]   ;;  %v3240_v58 = vld [vmem:[%s4510_s7 + $0x5b8] ss:$28 sps:$4 sm:$0xff]  }
 0x30e   :  { %v767_v4 = vmax.f32 %v720_v61, 0.0  ;;  %v724_v5 = vpop.f32.mrb[3].mxu0  ;;  %v765_v6 = vpop.f32.mrb[11].mxu1  ;;  %v3248_v61 = vld [vmem:[%s4510_s7 + $0x5f4] ss:$28 sps:$4 sm:$0xff]  }
 0x30f   :  { %v768_v7 = vmax.f32 %v722_v0, 0.0  ;;  %v770_v8 = vmax.f32 %v763_v1, 0.0  ;;  %v3243_v62 = vld [vmem:[%s4510_s7 + $0x5e8] ss:$28 sps:$4 sm:$0xff]   ;;  %v3246_v63 = vld [vmem:[%s4510_s7 + $0x5f0] ss:$28 sps:$4 sm:$0xff]  }
 0x310   :  { %v3983_v13 = vpack.c.bf16 %v767_v4, %v767_v4  ;;  %v3251_v0 = vld [vmem:[%s4510_s7 + $0x624] ss:$28 sps:$4 sm:$0xff]   ;;  %v3254_v1 = vld [vmem:[%s4510_s7 + $0x62c] ss:$28 sps:$4 sm:$0xff]   ;;  %v355_v4 = vsub.s32 2, %v3755_v36 }
 0x311   :  { %v3975_v10 = vpack.c.bf16 %v768_v7, %v768_v7  ;;  %v3993_v16 = vpack.c.bf16 %v770_v8, %v770_v8  ;;  %v3249_v2 = vld [vmem:[%s4510_s7 + $0x620] ss:$28 sps:$4 sm:$0xff]   ;;  %v3252_v3 = vld [vmem:[%s4510_s7 + $0x628] ss:$28 sps:$4 sm:$0xff]   ;;  %v3255_v7 = vld [vmem:[%s4510_s7 + $0x658] ss:$28 sps:$4 sm:$0xff]  }
 0x312   :  { %v3257_v5 = vld [vmem:[%s4510_s7 + $0x65c] ss:$28 sps:$4 sm:$0xff]   ;;  %v3260_v6 = vld [vmem:[%s4510_s7 + $0x664] ss:$28 sps:$4 sm:$0xff]  }
 0x313   :  { %2252 = vmatprep.mubr.bf16.mxu0 %v3975_v10  ;;  %2334 = vmatprep.mubr.bf16.mxu1 %v3975_v10  ;;  %v3258_v8 = vld [vmem:[%s4510_s7 + $0x660] ss:$28 sps:$4 sm:$0xff]  }
 0x314   :  { %2253 = vmatmul.mubr.bf16.vlgmr.msra.gmra.mrb[4].mxu0 %v3983_v13  ;;  %2335 = vmatmul.mubr.bf16.vlgmr.msra.gmra.mrb[12].mxu1 %v3983_v13 }
 0x315   :  { %2262 = vmatpush1.bf16.msra.mxu0 %v3177_v11  ;;  %2344 = vmatpush1.bf16.msra.mxu1 %v3180_v12  ;;  %v356_v11 = vrot.slane %v3963_v54, %v355_v4  ;;  %v3263_v12 = vld [vmem:[%s4510_s7 + $0x694] ss:$28 sps:$4 sm:$0xff]  }
 0x316   :  { %2293 = vmatprep.mubr.bf16.mxu0 %v3993_v16  ;;  %2375 = vmatprep.mubr.bf16.mxu1 %v3993_v16  ;;  %v3264_v54 = vld [vmem:[%s4510_s7 + $0x698] ss:$28 sps:$4 sm:$0xff]  }
 0x317   :  { %2263 = vmatprep.subr.bf16.mxu0 %v3185_v14  ;;  %2345 = vmatprep.subr.bf16.mxu1 %v3188_v15  ;;  %v3266_v14 = vld [vmem:[%s4510_s7 + $0x69c] ss:$28 sps:$4 sm:$0xff]   ;;  %v3261_v15 = vld [vmem:[%s4510_s7 + $0x690] ss:$28 sps:$4 sm:$0xff]  }
 0x319   :  { %2264 = vmatpush1.bf16.msra.mxu0 %v3183_v17  ;;  %2346 = vmatpush1.bf16.msra.mxu1 %v3186_v18  ;;  %v761_v17 = vadd.f32 %v3973_v60, %v356_v11  ;;  %v3269_v18 = vld [vmem:[%s4510_s7 + $0x6cc] ss:$28 sps:$4 sm:$0xff]   ;;  %v3331_v11 = vld [vmem:[%s4510_s7 + $0x600] ss:$28 sps:$4 sm:$0xff]  }
 0x31a   :  { %2265 = vmatprep.subr.bf16.mxu0 %v3191_v19  ;;  %2347 = vmatprep.subr.bf16.mxu1 %v3194_v20  ;;  %v3272_v19 = vld [vmem:[%s4510_s7 + $0x6d4] ss:$28 sps:$4 sm:$0xff]   ;;  %v3267_v20 = vld [vmem:[%s4510_s7 + $0x6c8] ss:$28 sps:$4 sm:$0xff]  }
 0x31b   :  { %v3270_v60 = vld [vmem:[%s4510_s7 + $0x6d0] ss:$28 sps:$4 sm:$0xff]  }
 0x31d   :  { %2266 = vmatpush1.bf16.msra.mxu0 %v3189_v21  ;;  %2348 = vmatpush1.bf16.msra.mxu1 %v3192_v22  ;;  %v769_v21 = vmax.f32 %v761_v17, 0.0  ;;  %v3275_v22 = vld [vmem:[%s4510_s7 + $0x14] ss:$28 sps:$4 sm:$0xff]  }
 0x31e   :  { %2267 = vmatprep.subr.bf16.mxu0 %v3197_v23  ;;  %2349 = vmatprep.subr.bf16.mxu1 %v3200_v24  ;;  %v3276_v23 = vld [vmem:[%s4510_s7 + $0x1d8] ss:$28 sps:$4 sm:$0xff]   ;;  %v3273_v24 = vld [vmem:[%s4510_s7 + $0x10] ss:$28 sps:$4 sm:$0xff]  }
 0x31f   :  { %v3333_v17 = vld [vmem:[%s4510_s7 + $0x2b0] ss:$28 sps:$4 sm:$0xff]  }
 0x321   :  { %2268 = vmatpush1.bf16.msra.mxu0 %v3195_v25  ;;  %2350 = vmatpush1.bf16.msra.mxu1 %v3198_v26  ;;  %v4187_v25 = vpack.c.bf16 %v769_v21, %v769_v21  ;;  %v3277_v26 = vld [vmem:[%s4510_s7 + $0x18] ss:$28 sps:$4 sm:$0xff]   ;;  %v3342_v21 = vld [vmem:[%s4510_s7 + $0x4b0] ss:$28 sps:$4 sm:$0xff]  }
 0x322   :  { %2269 = vmatprep.subr.bf16.mxu0 %v3203_v27  ;;  %2351 = vmatprep.subr.bf16.mxu1 %v3206_v28  ;;  %v3280_v27 = vld [vmem:[%s4510_s7 + $0x4c] ss:$28 sps:$4 sm:$0xff]  }
 0x323   :  { %v3281_v28 = vld [vmem:[%s4510_s7 + $0x210] ss:$28 sps:$4 sm:$0xff]  }
 0x325   :  { %2270 = vmatpush1.bf16.msra.mxu0 %v3201_v29  ;;  %2352 = vmatpush1.bf16.msra.mxu1 %v3204_v30  ;;  %v3278_v29 = vld [vmem:[%s4510_s7 + $0x48] ss:$28 sps:$4 sm:$0xff]   ;;  %v3282_v30 = vld [vmem:[%s4510_s7 + $0x50] ss:$28 sps:$4 sm:$0xff]  }
 0x326   :  { %2271 = vmatprep.subr.bf16.mxu0 %v3209_v31  ;;  %2353 = vmatprep.subr.bf16.mxu1 %v3212_v32  ;;  %v3285_v31 = vld [vmem:[%s4510_s7 + $0x84] ss:$28 sps:$4 sm:$0xff]  }
 0x327   :  { %v3286_v32 = vld [vmem:[%s4510_s7 + $0x248] ss:$28 sps:$4 sm:$0xff]  }
 0x329   :  { %2272 = vmatpush1.bf16.msra.mxu0 %v3207_v33  ;;  %2354 = vmatpush1.bf16.msra.mxu1 %v3210_v34  ;;  %v3283_v33 = vld [vmem:[%s4510_s7 + $0x80] ss:$28 sps:$4 sm:$0xff]  }
 0x32a   :  { %2273 = vmatprep.subr.bf16.mxu0 %v3215_v35  ;;  %2355 = vmatprep.subr.bf16.mxu1 %v3218_v38  ;;  %v3290_v34 = vld [vmem:[%s4510_s7 + $0xbc] ss:$28 sps:$4 sm:$0xff]  }
 0x32b   :  { %v3291_v35 = vld [vmem:[%s4510_s7 + $0x280] ss:$28 sps:$4 sm:$0xff]   ;;  %v3288_v38 = vld [vmem:[%s4510_s7 + $0xb8] ss:$28 sps:$4 sm:$0xff]  }
 0x32d   :  { %2274 = vmatpush1.bf16.msra.mxu0 %v3213_v40  ;;  %2356 = vmatpush1.bf16.msra.mxu1 %v3216_v41  ;;  %v3292_v40 = vld [vmem:[%s4510_s7 + $0xc0] ss:$28 sps:$4 sm:$0xff]   ;;  %v3295_v41 = vld [vmem:[%s4510_s7 + $0xf4] ss:$28 sps:$4 sm:$0xff]  }
 0x32e   :  { %2275 = vmatprep.subr.bf16.mxu0 %v3221_v42  ;;  %2357 = vmatprep.subr.bf16.mxu1 %v3224_v43  ;;  %v3296_v42 = vld [vmem:[%s4510_s7 + $0x2b8] ss:$28 sps:$4 sm:$0xff]   ;;  %v3293_v43 = vld [vmem:[%s4510_s7 + $0xf0] ss:$28 sps:$4 sm:$0xff]  }
 0x331   :  { %2276 = vmatpush1.bf16.msra.mxu0 %v3219_v44  ;;  %2358 = vmatpush1.bf16.msra.mxu1 %v3222_v45  ;;  %v3297_v44 = vld [vmem:[%s4510_s7 + $0xf8] ss:$28 sps:$4 sm:$0xff]   ;;  %v3300_v45 = vld [vmem:[%s4510_s7 + $0x12c] ss:$28 sps:$4 sm:$0xff]  }
 0x332   :  { %2277 = vmatprep.subr.bf16.mxu0 %v3227_v9  ;;  %2359 = vmatprep.subr.bf16.mxu1 %v3230_v46  ;;  %v3301_v9 = vld [vmem:[%s4510_s7 + $0x2f0] ss:$28 sps:$4 sm:$0xff]   ;;  %v3298_v46 = vld [vmem:[%s4510_s7 + $0x128] ss:$28 sps:$4 sm:$0xff]  }
 0x335   :  { %2278 = vmatpush1.bf16.msra.mxu0 %v3225_v47  ;;  %2360 = vmatpush1.bf16.msra.mxu1 %v3228_v48  ;;  %v3302_v47 = vld [vmem:[%s4510_s7 + $0x130] ss:$28 sps:$4 sm:$0xff]   ;;  %v3305_v48 = vld [vmem:[%s4510_s7 + $0x164] ss:$28 sps:$4 sm:$0xff]  }
 0x336   :  { %2279 = vmatprep.subr.bf16.mxu0 %v3233_v49  ;;  %2361 = vmatprep.subr.bf16.mxu1 %v3236_v50  ;;  %v3306_v49 = vld [vmem:[%s4510_s7 + $0x328] ss:$28 sps:$4 sm:$0xff]   ;;  %v3303_v50 = vld [vmem:[%s4510_s7 + $0x160] ss:$28 sps:$4 sm:$0xff]  }
 0x339   :  { %2280 = vmatpush1.bf16.msra.mxu0 %v3231_v51  ;;  %2362 = vmatpush1.bf16.msra.mxu1 %v3234_v52  ;;  %v3307_v51 = vld [vmem:[%s4510_s7 + $0x168] ss:$28 sps:$4 sm:$0xff]   ;;  %v3310_v52 = vld [vmem:[%s4510_s7 + $0x19c] ss:$28 sps:$4 sm:$0xff]  }
 0x33a   :  { %2281 = vmatprep.subr.bf16.mxu0 %v3239_v53  ;;  %2363 = vmatprep.subr.bf16.mxu1 %v3242_v56  ;;  %v3311_v53 = vld [vmem:[%s4510_s7 + $0x360] ss:$28 sps:$4 sm:$0xff]   ;;  %v3308_v56 = vld [vmem:[%s4510_s7 + $0x198] ss:$28 sps:$4 sm:$0xff]  }
 0x33d   :  { %2282 = vmatpush1.bf16.msra.mxu0 %v3237_v57  ;;  %2364 = vmatpush1.bf16.msra.mxu1 %v3240_v58  ;;  %v3312_v57 = vld [vmem:[%s4510_s7 + $0x1a0] ss:$28 sps:$4 sm:$0xff]   ;;  %v3315_v58 = vld [vmem:[%s4510_s7 + $0x1d4] ss:$28 sps:$4 sm:$0xff]  }
 0x33e   :  { %2283 = vmatprep.subr.bf16.mxu0 %v3245_v59  ;;  %2365 = vmatprep.subr.bf16.mxu1 %v3248_v61  ;;  %v3316_v59 = vld [vmem:[%s4510_s7 + $0x558] ss:$28 sps:$4 sm:$0xff]   ;;  %v3313_v61 = vld [vmem:[%s4510_s7 + $0x1d0] ss:$28 sps:$4 sm:$0xff]  }
 0x341   :  { %2284 = vmatpush1.bf16.msra.mxu0 %v3243_v62  ;;  %2366 = vmatpush1.bf16.msra.mxu1 %v3246_v63  ;;  %v3317_v62 = vld [vmem:[%s4510_s7 + $0x398] ss:$28 sps:$4 sm:$0xff]   ;;  %v3320_v63 = vld [vmem:[%s4510_s7 + $0x20c] ss:$28 sps:$4 sm:$0xff]  }
 0x342   :  { %2285 = vmatprep.subr.bf16.mxu0 %v3251_v0  ;;  %2367 = vmatprep.subr.bf16.mxu1 %v3254_v1  ;;  %v3321_v0 = vld [vmem:[%s4510_s7 + $0x590] ss:$28 sps:$4 sm:$0xff]   ;;  %v3318_v1 = vld [vmem:[%s4510_s7 + $0x208] ss:$28 sps:$4 sm:$0xff]  }
 0x345   :  { %2286 = vmatpush1.bf16.msra.mxu0 %v3249_v2  ;;  %2368 = vmatpush1.bf16.msra.mxu1 %v3252_v3  ;;  %v3322_v2 = vld [vmem:[%s4510_s7 + $0x3d0] ss:$28 sps:$4 sm:$0xff]   ;;  %v3325_v3 = vld [vmem:[%s4510_s7 + $0x244] ss:$28 sps:$4 sm:$0xff]  }
 0x346   :  { %2287 = vmatprep.subr.bf16.mxu0 %v3257_v5  ;;  %2369 = vmatprep.subr.bf16.mxu1 %v3260_v6  ;;  %v3326_v5 = vld [vmem:[%s4510_s7 + $0x5c8] ss:$28 sps:$4 sm:$0xff]   ;;  %v3323_v6 = vld [vmem:[%s4510_s7 + $0x240] ss:$28 sps:$4 sm:$0xff]  }
 0x349   :  { %2288 = vmatpush1.bf16.msra.mxu0 %v3255_v7  ;;  %2370 = vmatpush1.bf16.msra.mxu1 %v3258_v8  ;;  %v3327_v7 = vld [vmem:[%s4510_s7 + $0x408] ss:$28 sps:$4 sm:$0xff]   ;;  %v3330_v8 = vld [vmem:[%s4510_s7 + $0x27c] ss:$28 sps:$4 sm:$0xff]  }
 0x34a   :  { %2289 = vmatprep.subr.bf16.mxu0 %v3263_v12  ;;  %2371 = vmatprep.subr.bf16.mxu1 %v3266_v14  ;;  %v3328_v12 = vld [vmem:[%s4510_s7 + $0x278] ss:$28 sps:$4 sm:$0xff]   ;;  %v3332_v14 = vld [vmem:[%s4510_s7 + $0x440] ss:$28 sps:$4 sm:$0xff]  }
 0x34d   :  { %2290 = vmatpush1.bf16.msra.mxu0 %v3261_v15  ;;  %2372 = vmatpush1.bf16.msra.mxu1 %v3264_v54  ;;  %v3335_v15 = vld [vmem:[%s4510_s7 + $0x2b4] ss:$28 sps:$4 sm:$0xff]  }
 0x34e   :  { %2291 = vmatprep.subr.bf16.mxu0 %v3269_v18  ;;  %2373 = vmatprep.subr.bf16.mxu1 %v3272_v19  ;;  %v3336_v54 = vld [vmem:[%s4510_s7 + $0x638] ss:$28 sps:$4 sm:$0xff]   ;;  %v3340_v19 = vld [vmem:[%s4510_s7 + $0x2ec] ss:$28 sps:$4 sm:$0xff]  }
 0x34f   :  { %v3337_v18 = vld [vmem:[%s4510_s7 + $0x478] ss:$28 sps:$4 sm:$0xff]  }
 0x351   :  { %2292 = vmatpush1.bf16.msra.mxu0 %v3267_v20  ;;  %2374 = vmatpush1.bf16.msra.mxu1 %v3270_v60  ;;  %v3341_v20 = vld [vmem:[%s4510_s7 + $0x670] ss:$28 sps:$4 sm:$0xff]   ;;  %v3338_v60 = vld [vmem:[%s4510_s7 + $0x2e8] ss:$28 sps:$4 sm:$0xff]  }
 0x352   :  { %2384 = vmatprep.subr.bf16.mxu0 %v3275_v22  ;;  %2883 = vmatprep.subr.bf16.mxu1 %v3276_v23  ;;  %v3345_v22 = vld [vmem:[%s4510_s7 + $0x324] ss:$28 sps:$4 sm:$0xff]  }
 0x353   :  { %v3346_v23 = vld [vmem:[%s4510_s7 + $0x6a8] ss:$28 sps:$4 sm:$0xff]  }
 0x354   :  { %2294 = vmatmul.mubr.bf16.vlgmr.msra.gmra.mrb[4].mxu0 %v4187_v25  ;;  %2376 = vmatmul.mubr.bf16.vlgmr.msra.gmra.mrb[12].mxu1 %v4187_v25 }
 0x355   :  { %2385 = vmatpush1.bf16.msra.mxu0 %v3273_v24  ;;  %2416 = vmatprep.mubr.bf16.mxu0 %v3975_v10  ;;  %v3343_v24 = vld [vmem:[%s4510_s7 + $0x320] ss:$28 sps:$4 sm:$0xff]  }
 0x356   :  { %2884 = vmatpush3.bf16.msra.mxu1 %v3277_v26  ;;  %2498 = vmatprep.mubr.bf16.mxu1 %v3975_v10  ;;  %v3287_v10 = vld [vmem:[%s4510_s7 + $0x88] ss:$28 sps:$4 sm:$0xff]  }
 0x357   :  { %2386 = vmatprep.subr.bf16.mxu0 %v3280_v27  ;;  %2885 = vmatprep.subr.bf16.mxu1 %v3281_v28  ;;  %v3347_v26 = vld [vmem:[%s4510_s7 + $0x4e8] ss:$28 sps:$4 sm:$0xff]   ;;  %v3350_v27 = vld [vmem:[%s4510_s7 + $0x35c] ss:$28 sps:$4 sm:$0xff]  }
 0x358   :  { %v3351_v28 = vld [vmem:[%s4510_s7 + $0x6e0] ss:$28 sps:$4 sm:$0xff]  }
 0x359   :  { %2387 = vmatpush1.bf16.msra.mxu0 %v3278_v29  ;;  %v3348_v29 = vld [vmem:[%s4510_s7 + $0x358] ss:$28 sps:$4 sm:$0xff]  }
 0x35a   :  { %2886 = vmatpush3.bf16.msra.mxu1 %v3282_v30  ;;  %2388 = vmatprep.subr.bf16.mxu0 %v3285_v31  ;;  %v3352_v30 = vld [vmem:[%s4510_s7 + $0x520] ss:$28 sps:$4 sm:$0xff]   ;;  %v3355_v31 = vld [vmem:[%s4510_s7 + $0x394] ss:$28 sps:$4 sm:$0xff]  }
 0x35b   :  { %2887 = vmatprep.subr.bf16.mxu1 %v3286_v32  ;;  %v3353_v32 = vld [vmem:[%s4510_s7 + $0x390] ss:$28 sps:$4 sm:$0xff]  }
 0x35d   :  { %2389 = vmatpush1.bf16.msra.mxu0 %v3283_v33  ;;  %v3358_v33 = vld [vmem:[%s4510_s7 + $0x3cc] ss:$28 sps:$4 sm:$0xff]  }
 0x35e   :  { %2888 = vmatpush3.bf16.msra.mxu1 %v3287_v10  ;;  %2390 = vmatprep.subr.bf16.mxu0 %v3290_v34  ;;  %v3356_v10 = vld [vmem:[%s4510_s7 + $0x3c8] ss:$28 sps:$4 sm:$0xff]  }
 0x35f   :  { %2889 = vmatprep.subr.bf16.mxu1 %v3291_v35  ;;  %v3361_v34 = vld [vmem:[%s4510_s7 + $0x404] ss:$28 sps:$4 sm:$0xff]  }
 0x360   :  { %v3359_v35 = vld [vmem:[%s4510_s7 + $0x400] ss:$28 sps:$4 sm:$0xff]  }
 0x361   :  { %2391 = vmatpush1.bf16.msra.mxu0 %v3288_v38  ;;  %v3367_v38 = vld [vmem:[%s4510_s7 + $0x474] ss:$28 sps:$4 sm:$0xff]  }
 0x362   :  { %2890 = vmatpush3.bf16.msra.mxu1 %v3292_v40  ;;  %2392 = vmatprep.subr.bf16.mxu0 %v3295_v41  ;;  %v3365_v40 = vld [vmem:[%s4510_s7 + $0x470] ss:$28 sps:$4 sm:$0xff]  }
 0x363   :  { %2891 = vmatprep.subr.bf16.mxu1 %v3296_v42  ;;  %v3370_v41 = vld [vmem:[%s4510_s7 + $0x4ac] ss:$28 sps:$4 sm:$0xff]  }
 0x364   :  { %v3368_v42 = vld [vmem:[%s4510_s7 + $0x4a8] ss:$28 sps:$4 sm:$0xff]  }
 0x365   :  { %2393 = vmatpush1.bf16.msra.mxu0 %v3293_v43  ;;  %v3373_v43 = vld [vmem:[%s4510_s7 + $0x4e4] ss:$28 sps:$4 sm:$0xff]  }
 0x366   :  { %2892 = vmatpush3.bf16.msra.mxu1 %v3297_v44  ;;  %2394 = vmatprep.subr.bf16.mxu0 %v3300_v45  ;;  %v3371_v44 = vld [vmem:[%s4510_s7 + $0x4e0] ss:$28 sps:$4 sm:$0xff]  }
 0x367   :  { %2893 = vmatprep.subr.bf16.mxu1 %v3301_v9  ;;  %v3376_v45 = vld [vmem:[%s4510_s7 + $0x51c] ss:$28 sps:$4 sm:$0xff]  }
 0x368   :  { %v3374_v9 = vld [vmem:[%s4510_s7 + $0x518] ss:$28 sps:$4 sm:$0xff]  }
 0x369   :  { %2395 = vmatpush1.bf16.msra.mxu0 %v3298_v46  ;;  %v3379_v46 = vld [vmem:[%s4510_s7 + $0x554] ss:$28 sps:$4 sm:$0xff]  }
 0x36a   :  { %2894 = vmatpush3.bf16.msra.mxu1 %v3302_v47  ;;  %2396 = vmatprep.subr.bf16.mxu0 %v3305_v48  ;;  %v3377_v47 = vld [vmem:[%s4510_s7 + $0x550] ss:$28 sps:$4 sm:$0xff]  }
 0x36b   :  { %2895 = vmatprep.subr.bf16.mxu1 %v3306_v49  ;;  %v3382_v48 = vld [vmem:[%s4510_s7 + $0x58c] ss:$28 sps:$4 sm:$0xff]  }
 0x36c   :  { %v3380_v49 = vld [vmem:[%s4510_s7 + $0x588] ss:$28 sps:$4 sm:$0xff]  }
 0x36d   :  { %2397 = vmatpush1.bf16.msra.mxu0 %v3303_v50  ;;  %v3385_v50 = vld [vmem:[%s4510_s7 + $0x5c4] ss:$28 sps:$4 sm:$0xff]  }
 0x36e   :  { %2896 = vmatpush3.bf16.msra.mxu1 %v3307_v51  ;;  %2398 = vmatprep.subr.bf16.mxu0 %v3310_v52  ;;  %v3383_v51 = vld [vmem:[%s4510_s7 + $0x5c0] ss:$28 sps:$4 sm:$0xff]  }
 0x36f   :  { %2897 = vmatprep.subr.bf16.mxu1 %v3311_v53  ;;  %v3388_v52 = vld [vmem:[%s4510_s7 + $0x5fc] ss:$28 sps:$4 sm:$0xff]  }
 0x370   :  { %v3386_v53 = vld [vmem:[%s4510_s7 + $0x5f8] ss:$28 sps:$4 sm:$0xff]  }
 0x371   :  { %2399 = vmatpush1.bf16.msra.mxu0 %v3308_v56  ;;  %v3391_v56 = vld [vmem:[%s4510_s7 + $0x634] ss:$28 sps:$4 sm:$0xff]  }
 0x372   :  { %2898 = vmatpush3.bf16.msra.mxu1 %v3312_v57  ;;  %2400 = vmatprep.subr.bf16.mxu0 %v3315_v58  ;;  %v3389_v57 = vld [vmem:[%s4510_s7 + $0x630] ss:$28 sps:$4 sm:$0xff]  }
 0x373   :  { %2905 = vmatprep.subr.bf16.mxu1 %v3316_v59  ;;  %v3394_v58 = vld [vmem:[%s4510_s7 + $0x66c] ss:$28 sps:$4 sm:$0xff]  }
 0x374   :  { %v3392_v59 = vld [vmem:[%s4510_s7 + $0x668] ss:$28 sps:$4 sm:$0xff]  }
 0x375   :  { %2499 = vmatmul.mubr.bf16.vlgmr.msra.gmra.mrb[16].mxu1 %v3983_v13  ;;  %2401 = vmatpush1.bf16.msra.mxu0 %v3313_v61  ;;  %v3397_v61 = vld [vmem:[%s4510_s7 + $0x6a4] ss:$28 sps:$4 sm:$0xff]  }
 0x376   :  { %2906 = vmatpush3.bf16.msra.mxu1 %v3317_v62  ;;  %2538 = vmatprep.mubr.bf16.mxu1 %v3993_v16  ;;  %v3395_v62 = vld [vmem:[%s4510_s7 + $0x6a0] ss:$28 sps:$4 sm:$0xff]  }
 0x377   :  { %2402 = vmatprep.subr.bf16.mxu0 %v3320_v63  ;;  %2907 = vmatprep.subr.bf16.mxu1 %v3321_v0  ;;  %v3400_v63 = vld [vmem:[%s4510_s7 + $0x6dc] ss:$28 sps:$4 sm:$0xff]  }
 0x378   :  { %v3398_v0 = vld [vmem:[%s4510_s7 + $0x6d8] ss:$28 sps:$4 sm:$0xff]  }
 0x379   :  { %2403 = vmatpush1.bf16.msra.mxu0 %v3318_v1  ;;  %v1031_v1 = vld [vmem:[%s4511_s8] sm:$0x7f] }
 0x37a   :  { %2908 = vmatpush3.bf16.msra.mxu1 %v3322_v2  ;;  %2404 = vmatprep.subr.bf16.mxu0 %v3325_v3  ;;  %v1036_v2 = vrot.slane %v1031_v1, %v3758_v37  ;;  %v1044_v3 = vrot.slane %v1031_v1, %v355_v4 }
 0x37b   :  { %2909 = vmatprep.subr.bf16.mxu1 %v3326_v5  ;;  %v1040_v5 = vrot.slane %v1031_v1, %v3764_v39 }
 0x37d   :  { %2405 = vmatpush1.bf16.msra.mxu0 %v3323_v6  ;;  %v1048_v6 = vrot.slane %v1031_v1, %v359_v55 }
 0x37e   :  { %2910 = vmatpush3.bf16.msra.mxu1 %v3327_v7  ;;  %2406 = vmatprep.subr.bf16.mxu0 %v3330_v8 }
 0x37f   :  { %2911 = vmatprep.subr.bf16.mxu1 %v3331_v11 }
 0x381   :  { %2407 = vmatpush1.bf16.msra.mxu0 %v3328_v12 }
 0x382   :  { %2912 = vmatpush3.bf16.msra.mxu1 %v3332_v14  ;;  %2408 = vmatprep.subr.bf16.mxu0 %v3335_v15 }
 0x383   :  { %2913 = vmatprep.subr.bf16.mxu1 %v3336_v54 }
 0x385   :  { %2409 = vmatpush1.bf16.msra.mxu0 %v3333_v17 }
 0x386   :  { %2914 = vmatpush3.bf16.msra.mxu1 %v3337_v18  ;;  %2410 = vmatprep.subr.bf16.mxu0 %v3340_v19 }
 0x387   :  { %2915 = vmatprep.subr.bf16.mxu1 %v3341_v20 }
 0x389   :  { %2411 = vmatpush1.bf16.msra.mxu0 %v3338_v60 }
 0x38a   :  { %2916 = vmatpush3.bf16.msra.mxu1 %v3342_v21  ;;  %2412 = vmatprep.subr.bf16.mxu0 %v3345_v22 }
 0x38b   :  { %2917 = vmatprep.subr.bf16.mxu1 %v3346_v23 }
 0x38d   :  { %2413 = vmatpush1.bf16.msra.mxu0 %v3343_v24 }
 0x38e   :  { %2918 = vmatpush3.bf16.msra.mxu1 %v3347_v26  ;;  %2414 = vmatprep.subr.bf16.mxu0 %v3350_v27  ;;  %v1059_v26 = vsub.s32 6, %v3755_v36 }
 0x38f   :  { %2919 = vmatprep.subr.bf16.mxu1 %v3351_v28 }
 0x390   :  { %v1060_v27 = vrot.slane %v1031_v1, %v1059_v26 }
 0x391   :  { %2415 = vmatpush1.bf16.msra.mxu0 %v3348_v29 }
 0x392   :  { %2920 = vmatpush3.bf16.msra.mxu1 %v3352_v30  ;;  %2425 = vmatprep.subr.bf16.mxu0 %v3355_v31 }
 0x394   :  { %2417 = vmatmul.mubr.bf16.vlgmr.msra.gmra.mrb[8].mxu0 %v3983_v13  ;;  %v3364_v13 = vld [vmem:[%s4510_s7 + $0x43c] ss:$28 sps:$4 sm:$0xff]  }
 0x395   :  { %2539 = vmatmul.mubr.bf16.vlgmr.msra.gmra.mrb[20].mxu1 %v4187_v25  ;;  %2426 = vmatpush1.bf16.msra.mxu0 %v3353_v32 }
 0x396   :  { %2457 = vmatprep.mubr.bf16.mxu0 %v3993_v16  ;;  %2427 = vmatprep.subr.bf16.mxu0 %v3358_v33  ;;  %v3362_v16 = vld [vmem:[%s4510_s7 + $0x438] ss:$28 sps:$4 sm:$0xff]   ;;  %s3443_s7 = smov [#allocation3]  }
 0x397   :  { %s2566_s8 = sshll.u32 %s3443_s7, 4  ;;  %s2567_s8 = int_to_ptr.vmem [resolvable:$true] %s2566_s8 }
 0x398   :  { %s3415_s11 = scalar_lea.vmem %s2567_s8, 896  ;;  %p3420_p1 = scmp.lt.s32.totalorder %s2567_s8, %s2567_s8 }
 0x399   :  { %2428 = vmatpush1.bf16.msra.mxu0 %v3356_v10  ;;  %p3416_p0 = scmp.ne.s32.totalorder %s2567_s8, %s3415_s11  ;;  %p3421_p2 = scmp.lt.s32.totalorder %s3415_s11, %s3415_s11 }
 0x39a   :  { %2429 = vmatprep.subr.bf16.mxu0 %v3361_v34 }
 0x39b   :  { %p3422_p3 = por %p3421_p2, %p3420_p1 }
 0x39d   :  { %2430 = vmatpush1.bf16.msra.mxu0 %v3359_v35  ;;  %v1051_v35 = vsub.s32 4, %v3755_v36  ;;  %p3423_p4 = pnand %p3422_p3, %p3416_p0 }
 0x39e   :  { %2431 = vmatprep.subr.bf16.mxu0 %v3364_v13  ;;  %v1055_v13 = vsub.s32 5, %v3755_v36 }
 0x3a1   :  { %2432 = vmatpush1.bf16.msra.mxu0 %v3362_v16  ;;  %v1052_v16 = vrot.slane %v1031_v1, %v1051_v35 }
 0x3a2   :  { %2433 = vmatprep.subr.bf16.mxu0 %v3367_v38  ;;  %v1056_v38 = vrot.slane %v1031_v1, %v1055_v13 }
 0x3a5   :  { %2434 = vmatpush1.bf16.msra.mxu0 %v3365_v40 }
 0x3a6   :  { %2435 = vmatprep.subr.bf16.mxu0 %v3370_v41 }
 0x3a9   :  { %2436 = vmatpush1.bf16.msra.mxu0 %v3368_v42 }
 0x3aa   :  { %2437 = vmatprep.subr.bf16.mxu0 %v3373_v43 }
 0x3ad   :  { %2438 = vmatpush1.bf16.msra.mxu0 %v3371_v44 }
 0x3ae   :  { %2439 = vmatprep.subr.bf16.mxu0 %v3376_v45 }
 0x3b1   :  { %2440 = vmatpush1.bf16.msra.mxu0 %v3374_v9 }
 0x3b2   :  { %2441 = vmatprep.subr.bf16.mxu0 %v3379_v46 }
 0x3b5   :  { %2442 = vmatpush1.bf16.msra.mxu0 %v3377_v47 }
 0x3b6   :  { %2443 = vmatprep.subr.bf16.mxu0 %v3382_v48 }
 0x3b9   :  { %2444 = vmatpush1.bf16.msra.mxu0 %v3380_v49 }
 0x3ba   :  { %2445 = vmatprep.subr.bf16.mxu0 %v3385_v50 }
 0x3bd   :  { %2446 = vmatpush1.bf16.msra.mxu0 %v3383_v51 }
 0x3be   :  { %2447 = vmatprep.subr.bf16.mxu0 %v3388_v52 }
 0x3c1   :  { %2448 = vmatpush1.bf16.msra.mxu0 %v3386_v53 }
 0x3c2   :  { %2449 = vmatprep.subr.bf16.mxu0 %v3391_v56 }
 0x3c5   :  { %2450 = vmatpush1.bf16.msra.mxu0 %v3389_v57 }
 0x3c6   :  { %2451 = vmatprep.subr.bf16.mxu0 %v3394_v58 }
 0x3c9   :  { %2452 = vmatpush1.bf16.msra.mxu0 %v3392_v59 }
 0x3ca   :  { %2453 = vmatprep.subr.bf16.mxu0 %v3397_v61 }
 0x3cd   :  { %2454 = vmatpush1.bf16.msra.mxu0 %v3395_v62 }
 0x3ce   :  { %2455 = vmatprep.subr.bf16.mxu0 %v3400_v63 }
 0x3d1   :  { %2456 = vmatpush1.bf16.msra.mxu0 %v3398_v0 }
 0x3d4   :  { %2458 = vmatmul.mubr.bf16.vlgmr.msra.gmra.mrb[8].mxu0 %v4187_v25 }
 0x427   :  { %v2295_v7 = vpop.f32.mrb[4].mxu0  ;;  %v2377_v8 = vpop.f32.mrb[12].mxu1 }
 0x428   :  { %v2937_v11 = vadd.f32 %v2295_v7, %v1036_v2  ;;  %v2939_v12 = vadd.f32 %v2377_v8, %v1044_v3  ;;  %v2297_v14 = vpop.f32.mrb[5].mxu0  ;;  %v2379_v25 = vpop.f32.mrb[13].mxu1 }
 0x429   :  { %v2938_v15 = vadd.f32 %v2297_v14, %v1040_v5  ;;  %v2940_v54 = vadd.f32 %v2379_v25, %v1048_v6  ;;  %v2299_v17 = vpop.f32.mrb[6].mxu0  ;;  %v2381_v18 = vpop.f32.mrb[14].mxu1 }
 0x42a   :  { %3401 = vtanh.f32 %v2937_v11  ;;  %v2300_v37 = vpop.f32.mrb[7].mxu0  ;;  %v2382_v19 = vpop.f32.mrb[15].mxu1 }
 0x42b   :  { %3403 = vtanh.f32 %v2939_v12 }
 0x42c   :  { %3405 = vtanh.f32 %v2938_v15 }
 0x42d   :  { %3407 = vtanh.f32 %v2940_v54 }
 0x434   :  { %v3402_v39 = vpop.eup %3401 }
 0x435   :  { %v3404_v4 = vpop.eup %3403  ;;  %2553 = vst [vmem:[#allocation3] sm:$0xff] %v3402_v39 }
 0x436   :  { %v3406_v55 = vpop.eup %3405  ;;  %2555 = vst [vmem:[#allocation3 + $0x10] sm:$0xff] %v3404_v4 }
 0x437   :  { %v3408_v20 = vpop.eup %3407  ;;  %2554 = vst [vmem:[#allocation3 + $0x8] sm:$0xff] %v3406_v55 }
 0x438   :  { %2556 = vst [vmem:[#allocation3 + $0x18] sm:$0xff] %v3408_v20 }
 0x448   :  { %v2899_v60 = vpop.f32.mrb[16].mxu1 }
 0x449   :  { %v2900_v21 = vpop.f32.mrb[17].mxu1 }
 0x44a   :  { %v2901_v22 = vadd.f32 %v2900_v21, %v2899_v60  ;;  %v2902_v23 = vpop.f32.mrb[18].mxu1 }
 0x44b   :  { %v2903_v24 = vpop.f32.mrb[19].mxu1 }
 0x44c   :  { %v2501_v30 = vadd.f32 %v2901_v22, %v1060_v27 }
 0x468   :  { %v2921_v28 = vpop.f32.mrb[20].mxu1 }
 0x469   :  { %v2922_v29 = vpop.f32.mrb[21].mxu1 }
 0x46a   :  { %v2923_v31 = vadd.f32 %v2922_v29, %v2921_v28  ;;  %v2924_v32 = vpop.f32.mrb[22].mxu1 }
 0x46b   :  { %v2925_v33 = vpop.f32.mrb[23].mxu1 }
 0x46c   :  { %v2541_v10 = vadd.f32 %v2923_v31, %v2501_v30 }
 0x46e   :  { %3409 = vtanh.f32 %v2541_v10 }
 0x478   :  { %v3410_v34 = vpop.eup %3409 }
 0x479   :  { %2559 = vst.msk [vmem:[#allocation3 + $0x30] sm:$0xff] %vm45_vm2, %v3410_v34 }
 0x4a7   :  { %v2459_v40 = vpop.f32.mrb[8].mxu0 }
 0x4a8   :  { %v2941_v41 = vadd.f32 %v2459_v40, %v1052_v16  ;;  %v2461_v42 = vpop.f32.mrb[9].mxu0 }
 0x4a9   :  { %v2942_v43 = vadd.f32 %v2461_v42, %v1056_v38  ;;  %v2463_v44 = vpop.f32.mrb[10].mxu0 }
 0x4aa   :  { %3411 = vtanh.f32 %v2941_v41  ;;  %v2464_v45 = vpop.f32.mrb[11].mxu0 }
 0x4ab   :  { %3413 = vtanh.f32 %v2942_v43 }
 0x4b4   :  { %v3412_v9 = vpop.eup %3411 }
 0x4b5   :  { %v3414_v46 = vpop.eup %3413  ;;  %2557 = vst [vmem:[#allocation3 + $0x20] sm:$0xff] %v3412_v9 }
 0x4b6   :  { %2558 = vst [vmem:[#allocation3 + $0x28] sm:$0xff] %v3414_v46 }
 0x4b7   :  { %3426 = shalt.err (!%p3423_p4)
}
 0x4b8   :  { %s3427_s14 = scalar_lea.hbm %s4512_s9, 896 }
 0x4b9   :  { %p3428_p5 = scmp.ne.s32.totalorder %s4512_s9, %s3427_s14  ;;  %p3431_p6 = scmp.lt.u32.totalorder %s3427_s14, %s4512_s9 }
 0x4bb   :  { %p3433_p7 = pnand %p3431_p6, %p3428_p5 }
 0x4bd   :  { %3436 = shalt.err (!%p3433_p7)
}
 0x4be   :  { %2569 = dma.vmem_to_hbm [thread:$0]  %s2567_s8, 896, %s4512_s9, [#allocation4]  }
 0x4bf   :  { %3437 = dma.done.wait [#allocation4], 896  }
 0x4c0   :  { %3438 = vsyncadd [#allocation4], 4294966400 }
 0x4c1   :  { %2573 = vsyncpa [#allocation4], 1 }

</bundles_post_ra>
